<compile_context>
chip_gen: v7x
topology: tpu7x:2x2x1
jax: 0.10.0
libtpu: 0.0.40
codegen_flags: <defaults>
</compile_context>

<pallas_src>
import jax
import jax.numpy as jnp
from jax import lax
from jax.experimental import pallas as pl
from jax.experimental.pallas import tpu as pltpu

G = 10                 # groups
CG = 16                # channels per group
C = G * CG             # 160 total channels (group blocks are contiguous -> lane dim == NCHW channel)
H = W = 14             # spatial
KH = KW = 3            # kernel
HP = H + 2             # padded spatial
WP = W + 2
NPIX = HP * WP         # 256 flat padded pixels (row p = hp*WP + wp)
OUT_ROWS = H * WP      # 224 output rows (14 valid cols + 2 garbage cols per row, dropped later)
ROW_BLK = OUT_ROWS // 2  # 112 rows per grid step (2 steps -> both TCs on v7x)
WIN = ROW_BLK + (KH - 1) * WP  # 144-row input window per (step, kw)


def relu_gconv_kernel(xs_ref, w_ref, o_ref):
    # xs_ref: (KW, NPIX, C)   flat padded input, plane kw pre-shifted by kw pixels
    # w_ref : (KH*KW, C, C)   block-diagonal per-tap weights
    # o_ref : (ROW_BLK, C)    lane-dense output rows [i*ROW_BLK, (i+1)*ROW_BLK)
    i = pl.program_id(0)
    base = pl.multiple_of(i * ROW_BLK, WP)           # 0 or 112 -> sublane-tile aligned
    acc = jnp.zeros((ROW_BLK, C), dtype=jnp.float32)
    for kw in range(KW):
        win = xs_ref[kw, pl.ds(base, WIN), :]        # aligned (144, 160) load
        win = jnp.maximum(win, 0.0)                  # fused ReLU (VPU)
        for kh in range(KH):
            slab = win[kh * WP:kh * WP + ROW_BLK, :]     # aligned static sub-slice (112, 160)
            acc = acc + jnp.dot(slab, w_ref[kh * KW + kw],
                                preferred_element_type=jnp.float32)
    o_ref[...] = acc


def relu_grouped_conv(x_nchw, w_oihw):
    """x_nchw: (1, 160, 14, 14), w_oihw: (160, 16, 3, 3) -> (1, 160, 14, 14)."""
    dt = x_nchw.dtype
    # NCHW -> HWC, zero-pad spatial by 1, flatten spatial, build 3 kw-shifted copies.
    xc = jnp.transpose(x_nchw[0], (1, 2, 0))                 # (14, 14, 160)
    xp = jnp.pad(xc, ((1, 1), (1, 1), (0, 0)))               # (16, 16, 160)
    xf = xp.reshape(NPIX, C)                                 # (256, 160)
    xf = jnp.pad(xf, ((0, KW - 1), (0, 0)))                  # (258, 160) zero tail
    xs = jnp.stack([xf[k:k + NPIX] for k in range(KW)], 0)   # (3, 256, 160)

    # OIHW grouped weights -> block-diagonal (9, 160, 160) per tap.
    wg = w_oihw.reshape(G, CG, CG, KH, KW)                   # (g, co, ci, kh, kw)
    wg = jnp.transpose(wg, (0, 3, 4, 2, 1))                  # (g, kh, kw, ci, co)
    wbd = jnp.zeros((KH, KW, G, CG, G, CG), dtype=w_oihw.dtype)
    gi = jnp.arange(G)
    wbd = wbd.at[:, :, gi, :, gi, :].set(wg)                 # only diagonal group blocks
    wbd = wbd.reshape(KH * KW, C, C)                         # (9, 160, 160)

    y_flat = pl.pallas_call(
        relu_gconv_kernel,
        out_shape=jax.ShapeDtypeStruct((OUT_ROWS, C), jnp.float32),
        grid_spec=pltpu.PrefetchScalarGridSpec(
            num_scalar_prefetch=0,
            grid=(2,),
            in_specs=[
                pl.BlockSpec((KW, NPIX, C), lambda i: (0, 0, 0)),       # full input, one bulk DMA
                pl.BlockSpec((KH * KW, C, C), lambda i: (0, 0, 0)),     # full weights, one bulk DMA
            ],
            out_specs=pl.BlockSpec((ROW_BLK, C), lambda i: (i, 0)),
        ),
        compiler_params=pltpu.CompilerParams(
            dimension_semantics=("parallel",)),
    )(xs, wbd)

    # (224, 160) -> (14, 16, 160) -> drop the 2 garbage columns -> NCHW
    y = y_flat.reshape(H, WP, C)[:, :W, :]                   # (14, 14, 160)
    y = jnp.transpose(y, (2, 0, 1)).reshape(1, C, H, W)
    return y.astype(dt)


if __name__ == "__main__":
    key = jax.random.PRNGKey(0)
    kx, kw_ = jax.random.split(key)
    x = jax.random.normal(kx, (1, C, H, W), dtype=jnp.float32)
    w = jax.random.normal(kw_, (C, CG, KH, KW), dtype=jnp.float32) * 0.05

    y = relu_grouped_conv(x, w)
    y = jax.block_until_ready(y)

    # reference check against XLA's grouped conv of relu(x)
    y_ref = lax.conv_general_dilated(
        jnp.maximum(x, 0.0), w,
        window_strides=(1, 1), padding=((1, 1), (1, 1)),
        dimension_numbers=("NCHW", "OIHW", "NCHW"),
        feature_group_count=G)
    assert y.shape == (1, C, H, W)
    assert jnp.allclose(y, y_ref, atol=1e-4, rtol=1e-4)

    print("KERNEL_OK")
</pallas_src>

<mosaic_0001>
module attributes {stable_mosaic.version = 11 : i64} {
  func.func @relu_gconv_kernel(%arg0: i32, %arg1: memref<3x256x160xf32, #tpu.memory_space<vmem>>, %arg2: memref<9x160x160xf32, #tpu.memory_space<vmem>>, %arg3: memref<112x160xf32, #tpu.memory_space<vmem>>) attributes {dimension_semantics = [#tpu.dimension_semantics<parallel>], iteration_bounds = array<i64: 2>, scalar_prefetch = 0 : i64, scratch_operands = 0 : i64, tpu.core_type = #tpu.core_type<tc>, window_params = [{pipeline_mode = #tpu.pipeline_mode<synchronous>, transform_indices = @transform_0, window_bounds = array<i64: 3, 256, 160>}, {pipeline_mode = #tpu.pipeline_mode<synchronous>, transform_indices = @transform_1, window_bounds = array<i64: 9, 160, 160>}, {transform_indices = @transform_2, window_bounds = array<i64: 112, 160>}]} {
    %c112_i32 = arith.constant 112 : i32
    %0 = arith.muli %arg0, %c112_i32 : i32
    %1 = tpu.assume_multiple %0, 16 : i32
    %cst = arith.constant 0.000000e+00 : f32
    %2 = vector.broadcast %cst : f32 to vector<112x160xf32>
    %c0 = arith.constant 0 : index
    %3 = arith.index_cast %1 : i32 to index
    %c0_0 = arith.constant 0 : index
    %4 = vector.load %arg1[%c0, %3, %c0_0] : memref<3x256x160xf32, #tpu.memory_space<vmem>>, vector<1x144x160xf32>
    %5 = vector.shape_cast %4 : vector<1x144x160xf32> to vector<144x160xf32>
    %cst_1 = arith.constant 0.000000e+00 : f32
    %6 = vector.broadcast %cst_1 : f32 to vector<144x160xf32>
    %7 = arith.maximumf %5, %6 : vector<144x160xf32>
    %8 = vector.extract_strided_slice %7 {offsets = [0, 0], sizes = [112, 160], strides = [1, 1]} : vector<144x160xf32> to vector<112x160xf32>
    %c0_2 = arith.constant 0 : index
    %c0_3 = arith.constant 0 : index
    %c0_4 = arith.constant 0 : index
    %9 = vector.load %arg2[%c0_2, %c0_3, %c0_4] : memref<9x160x160xf32, #tpu.memory_space<vmem>>, vector<1x160x160xf32>
    %10 = vector.shape_cast %9 : vector<1x160x160xf32> to vector<160x160xf32>
    %cst_5 = arith.constant dense<0.000000e+00> : vector<112x160xf32>
    %11 = tpu.matmul %8, %10, %cst_5 {dimension_numbers = #tpu.dot_dimension_numbers<[1], [0], [0], [1], [0, 0, 1, 1], [], []>} : vector<112x160xf32>, vector<160x160xf32>, vector<112x160xf32> -> vector<112x160xf32>
    %12 = arith.addf %2, %11 : vector<112x160xf32>
    %13 = vector.extract_strided_slice %7 {offsets = [16, 0], sizes = [112, 160], strides = [1, 1]} : vector<144x160xf32> to vector<112x160xf32>
    %c3 = arith.constant 3 : index
    %c0_6 = arith.constant 0 : index
    %c0_7 = arith.constant 0 : index
    %14 = vector.load %arg2[%c3, %c0_6, %c0_7] : memref<9x160x160xf32, #tpu.memory_space<vmem>>, vector<1x160x160xf32>
    %15 = vector.shape_cast %14 : vector<1x160x160xf32> to vector<160x160xf32>
    %cst_8 = arith.constant dense<0.000000e+00> : vector<112x160xf32>
    %16 = tpu.matmul %13, %15, %cst_8 {dimension_numbers = #tpu.dot_dimension_numbers<[1], [0], [0], [1], [0, 0, 1, 1], [], []>} : vector<112x160xf32>, vector<160x160xf32>, vector<112x160xf32> -> vector<112x160xf32>
    %17 = arith.addf %12, %16 : vector<112x160xf32>
    %18 = vector.extract_strided_slice %7 {offsets = [32, 0], sizes = [112, 160], strides = [1, 1]} : vector<144x160xf32> to vector<112x160xf32>
    %c6 = arith.constant 6 : index
    %c0_9 = arith.constant 0 : index
    %c0_10 = arith.constant 0 : index
    %19 = vector.load %arg2[%c6, %c0_9, %c0_10] : memref<9x160x160xf32, #tpu.memory_space<vmem>>, vector<1x160x160xf32>
    %20 = vector.shape_cast %19 : vector<1x160x160xf32> to vector<160x160xf32>
    %cst_11 = arith.constant dense<0.000000e+00> : vector<112x160xf32>
    %21 = tpu.matmul %18, %20, %cst_11 {dimension_numbers = #tpu.dot_dimension_numbers<[1], [0], [0], [1], [0, 0, 1, 1], [], []>} : vector<112x160xf32>, vector<160x160xf32>, vector<112x160xf32> -> vector<112x160xf32>
    %22 = arith.addf %17, %21 : vector<112x160xf32>
    %c1 = arith.constant 1 : index
    %23 = arith.index_cast %1 : i32 to index
    %c0_12 = arith.constant 0 : index
    %24 = vector.load %arg1[%c1, %23, %c0_12] : memref<3x256x160xf32, #tpu.memory_space<vmem>>, vector<1x144x160xf32>
    %25 = vector.shape_cast %24 : vector<1x144x160xf32> to vector<144x160xf32>
    %cst_13 = arith.constant 0.000000e+00 : f32
    %26 = vector.broadcast %cst_13 : f32 to vector<144x160xf32>
    %27 = arith.maximumf %25, %26 : vector<144x160xf32>
    %28 = vector.extract_strided_slice %27 {offsets = [0, 0], sizes = [112, 160], strides = [1, 1]} : vector<144x160xf32> to vector<112x160xf32>
    %c1_14 = arith.constant 1 : index
    %c0_15 = arith.constant 0 : index
    %c0_16 = arith.constant 0 : index
    %29 = vector.load %arg2[%c1_14, %c0_15, %c0_16] : memref<9x160x160xf32, #tpu.memory_space<vmem>>, vector<1x160x160xf32>
    %30 = vector.shape_cast %29 : vector<1x160x160xf32> to vector<160x160xf32>
    %cst_17 = arith.constant dense<0.000000e+00> : vector<112x160xf32>
    %31 = tpu.matmul %28, %30, %cst_17 {dimension_numbers = #tpu.dot_dimension_numbers<[1], [0], [0], [1], [0, 0, 1, 1], [], []>} : vector<112x160xf32>, vector<160x160xf32>, vector<112x160xf32> -> vector<112x160xf32>
    %32 = arith.addf %22, %31 : vector<112x160xf32>
    %33 = vector.extract_strided_slice %27 {offsets = [16, 0], sizes = [112, 160], strides = [1, 1]} : vector<144x160xf32> to vector<112x160xf32>
    %c4 = arith.constant 4 : index
    %c0_18 = arith.constant 0 : index
    %c0_19 = arith.constant 0 : index
    %34 = vector.load %arg2[%c4, %c0_18, %c0_19] : memref<9x160x160xf32, #tpu.memory_space<vmem>>, vector<1x160x160xf32>
    %35 = vector.shape_cast %34 : vector<1x160x160xf32> to vector<160x160xf32>
    %cst_20 = arith.constant dense<0.000000e+00> : vector<112x160xf32>
    %36 = tpu.matmul %33, %35, %cst_20 {dimension_numbers = #tpu.dot_dimension_numbers<[1], [0], [0], [1], [0, 0, 1, 1], [], []>} : vector<112x160xf32>, vector<160x160xf32>, vector<112x160xf32> -> vector<112x160xf32>
    %37 = arith.addf %32, %36 : vector<112x160xf32>
    %38 = vector.extract_strided_slice %27 {offsets = [32, 0], sizes = [112, 160], strides = [1, 1]} : vector<144x160xf32> to vector<112x160xf32>
    %c7 = arith.constant 7 : index
    %c0_21 = arith.constant 0 : index
    %c0_22 = arith.constant 0 : index
    %39 = vector.load %arg2[%c7, %c0_21, %c0_22] : memref<9x160x160xf32, #tpu.memory_space<vmem>>, vector<1x160x160xf32>
    %40 = vector.shape_cast %39 : vector<1x160x160xf32> to vector<160x160xf32>
    %cst_23 = arith.constant dense<0.000000e+00> : vector<112x160xf32>
    %41 = tpu.matmul %38, %40, %cst_23 {dimension_numbers = #tpu.dot_dimension_numbers<[1], [0], [0], [1], [0, 0, 1, 1], [], []>} : vector<112x160xf32>, vector<160x160xf32>, vector<112x160xf32> -> vector<112x160xf32>
    %42 = arith.addf %37, %41 : vector<112x160xf32>
    %c2 = arith.constant 2 : index
    %43 = arith.index_cast %1 : i32 to index
    %c0_24 = arith.constant 0 : index
    %44 = vector.load %arg1[%c2, %43, %c0_24] : memref<3x256x160xf32, #tpu.memory_space<vmem>>, vector<1x144x160xf32>
    %45 = vector.shape_cast %44 : vector<1x144x160xf32> to vector<144x160xf32>
    %cst_25 = arith.constant 0.000000e+00 : f32
    %46 = vector.broadcast %cst_25 : f32 to vector<144x160xf32>
    %47 = arith.maximumf %45, %46 : vector<144x160xf32>
    %48 = vector.extract_strided_slice %47 {offsets = [0, 0], sizes = [112, 160], strides = [1, 1]} : vector<144x160xf32> to vector<112x160xf32>
    %c2_26 = arith.constant 2 : index
    %c0_27 = arith.constant 0 : index
    %c0_28 = arith.constant 0 : index
    %49 = vector.load %arg2[%c2_26, %c0_27, %c0_28] : memref<9x160x160xf32, #tpu.memory_space<vmem>>, vector<1x160x160xf32>
    %50 = vector.shape_cast %49 : vector<1x160x160xf32> to vector<160x160xf32>
    %cst_29 = arith.constant dense<0.000000e+00> : vector<112x160xf32>
    %51 = tpu.matmul %48, %50, %cst_29 {dimension_numbers = #tpu.dot_dimension_numbers<[1], [0], [0], [1], [0, 0, 1, 1], [], []>} : vector<112x160xf32>, vector<160x160xf32>, vector<112x160xf32> -> vector<112x160xf32>
    %52 = arith.addf %42, %51 : vector<112x160xf32>
    %53 = vector.extract_strided_slice %47 {offsets = [16, 0], sizes = [112, 160], strides = [1, 1]} : vector<144x160xf32> to vector<112x160xf32>
    %c5 = arith.constant 5 : index
    %c0_30 = arith.constant 0 : index
    %c0_31 = arith.constant 0 : index
    %54 = vector.load %arg2[%c5, %c0_30, %c0_31] : memref<9x160x160xf32, #tpu.memory_space<vmem>>, vector<1x160x160xf32>
    %55 = vector.shape_cast %54 : vector<1x160x160xf32> to vector<160x160xf32>
    %cst_32 = arith.constant dense<0.000000e+00> : vector<112x160xf32>
    %56 = tpu.matmul %53, %55, %cst_32 {dimension_numbers = #tpu.dot_dimension_numbers<[1], [0], [0], [1], [0, 0, 1, 1], [], []>} : vector<112x160xf32>, vector<160x160xf32>, vector<112x160xf32> -> vector<112x160xf32>
    %57 = arith.addf %52, %56 : vector<112x160xf32>
    %58 = vector.extract_strided_slice %47 {offsets = [32, 0], sizes = [112, 160], strides = [1, 1]} : vector<144x160xf32> to vector<112x160xf32>
    %c8 = arith.constant 8 : index
    %c0_33 = arith.constant 0 : index
    %c0_34 = arith.constant 0 : index
    %59 = vector.load %arg2[%c8, %c0_33, %c0_34] : memref<9x160x160xf32, #tpu.memory_space<vmem>>, vector<1x160x160xf32>
    %60 = vector.shape_cast %59 : vector<1x160x160xf32> to vector<160x160xf32>
    %cst_35 = arith.constant dense<0.000000e+00> : vector<112x160xf32>
    %61 = tpu.matmul %58, %60, %cst_35 {dimension_numbers = #tpu.dot_dimension_numbers<[1], [0], [0], [1], [0, 0, 1, 1], [], []>} : vector<112x160xf32>, vector<160x160xf32>, vector<112x160xf32> -> vector<112x160xf32>
    %62 = arith.addf %57, %61 : vector<112x160xf32>
    %c0_36 = arith.constant 0 : index
    %c0_37 = arith.constant 0 : index
    %63 = vector.load %arg3[%c0_36, %c0_37] : memref<112x160xf32, #tpu.memory_space<vmem>>, vector<112x160xf32>
    tpu.vector_store %arg3[%c0_36, %c0_37], %62 {strides = array<i32>} : memref<112x160xf32, #tpu.memory_space<vmem>>, vector<112x160xf32>,
    return
  }
  func.func @transform_0(%arg0: i32) -> (i32, i32, i32) {
    %c0_i32 = arith.constant 0 : i32
    %c0_i32_0 = arith.constant 0 : i32
    %c0_i32_1 = arith.constant 0 : i32
    %c0_i32_2 = arith.constant 0 : i32
    return %c0_i32, %c0_i32_0, %c0_i32_1 : i32, i32, i32
  }
  func.func @transform_1(%arg0: i32) -> (i32, i32, i32) {
    %c0_i32 = arith.constant 0 : i32
    %c0_i32_0 = arith.constant 0 : i32
    %c0_i32_1 = arith.constant 0 : i32
    %c0_i32_2 = arith.constant 0 : i32
    return %c0_i32, %c0_i32_0, %c0_i32_1 : i32, i32, i32
  }
  func.func @transform_2(%arg0: i32) -> (i32, i32) {
    %c0_i32 = arith.constant 0 : i32
    %c0_i32_0 = arith.constant 0 : i32
    return %arg0, %c0_i32 : i32, i32
  }
}

</mosaic_0001>

<bundles_post_ra>
// kernel: tpu_custom_call.1
= control target key start
LH: loop header
LB: loop body
LE: loop exit
PB: predicated region body
PF: predicated region fallthrough
CT: control target
= control target key end

     0   :  { %7 = vsyncpa [#allocation3], 0  ;;  %s3435_s9 = smov 0   ;;  %s4277_s0 = inlined_call_operand.vmem [shape: f32[3,256,160], index: 0, kind: input, shape index: {}]   ;;  %s4278_s1 = inlined_call_operand.hbm [shape: f32[9,160,160], index: 1, kind: input, shape index: {}]   ;;  %s4279_s2 = inlined_call_operand.vmem [shape: f32[224,160], index: 2, kind: output, shape index: {}]  }
   0x1 LB: > { %s3441_s10 = sadd.s32 4294967295, %s3415_s9   ;;  %p2536_p0 = scmp.ge.s32.totalorder %s3415_s9, 1  ;;  %s3415_s9 = sphi %s3435_s9, %s13_s9  }
   0x2   : > { %p86_p1 = scmp.lt.s32.totalorder %s3415_s9, 3  ;;  %s3417_s11 = smov [#allocation2]  }
   0x3   : > { %s101_s12 = sshll.u32 %s3417_s11, 4  ;;  %p4280_p3 = scmp.eq.s32.totalorder %s3441_s10, 0  ;;  %s102_s12 = int_to_ptr.vmem [resolvable:$true] %s101_s12 }
   0x4   : > { %p3445_p2 = pnand %p2536_p0, %p86_p1  ;;  %s3377_s17 = scalar_lea.hbm %s4278_s1, 46080 }
   0x5   : > { %p3378_p6 = scmp.ne.s32.totalorder %s4278_s1, %s3377_s17  ;;  %p3384_p10 = scmp.lt.u32.totalorder %s3377_s17, %s4278_s1 }
   0x6   : > { %s4320_s13 = scalar_select %p3445_p2, 1, 0 }
   0x7   : > { %p3360_p4 = pneg %p3445_p2 }
   0x9   : > { %p3454_p5 = pnand %p4280_p3, %p3360_p4 }
   0xb   : > { %p3379_p7 = pneg %p3454_p5 }
   0xd   : > { %p3380_p8 = pnand %p3379_p7, %p3378_p6 }
   0xf   : > { %p3381_p9 = pneg %p3380_p8 }
  0x11   : > { %p3386_p11 = pnand %p3384_p10, %p3381_p9 }
  0x13   : > { %3389 = shalt.err (!%p3386_p11)
}
  0x14   : > { %s3390_s22 = scalar_lea.vmem %s102_s12, 46080  ;;  %p3398_p1 = scmp.lt.s32.totalorder %s102_s12, %s102_s12 }
  0x15   : > { %p3391_p12 = scmp.ne.s32.totalorder %s102_s12, %s3390_s22  ;;  %p3399_p4 = scmp.lt.s32.totalorder %s3390_s22, %s3390_s22 }
  0x17   : > { %p3393_p13 = pnand %p3391_p12, %p3379_p7  ;;  %p3400_p3 = por %p3399_p4, %p3398_p1 }
  0x19   : > { %p3394_p0 = pneg %p3393_p13 }
  0x1b   : > { %p3401_p2 = pnand %p3400_p3, %p3394_p0 }
  0x1d   : > { %3404 = shalt.err (!%p3401_p2)
}
  0x1e   : > { %s3418_s23 = smov 256   ;;  %s3419_s24 = smov 16  }
  0x1f   : > { %3363 = dma.hbm_to_vmem [thread:$0]  (!%p3454_p5), %s4278_s1, 46080, %s102_s12, [#allocation3], %s3418_s23, %s3418_s23, %s3419_s24  }
  0x20   : > { %p4322_p6 = scmp.ne.s32.totalorder %s4320_s13, 0 }
  0x22   : > { %117 = sbr.rel (%p4322_p6) target bundleno = 553 (0x229), region = 28 }
  0x29   : > { %p4323_p8 = scmp.eq.s32.totalorder %s3441_s10, 0 }
  0x2b   : > { %3410 = dma.done.wait (%p4323_p8), [#allocation3], 46080   ;;  %p4324_p7 = pmov %p4323_p8 }
  0x2c   : > { %v262_v0 = vld [vmem:[#allocation2 + $0x3c8] sm:$0xff]  ;;  %v264_v1 = vld [vmem:[#allocation2 + $0x3d8] sm:$0xff]  ;;  %v261_v5 = vld [vmem:[#allocation2 + $0x3c0] sm:$0xff]  ;;  %s142_s27 = smul.u32 112, %s3441_s10  ;;  %vm301_vm0 = vcmask 261120  }
  0x2d   : > { %3412 = vsyncadd (%p4324_p7), [#allocation3], 4294921216  ;;  %v1209_v2 = vld [vmem:[#allocation2 + $0x508] sm:$0xff]  ;;  %v2752_v3 = vpack.c.bf16 %v264_v1, %v262_v0  ;;  %v1211_v4 = vld [vmem:[#allocation2 + $0x518] sm:$0xff]  ;;  %s135_s5 = smul.u32 14, %s3441_s10 }
  0x2e   : > { %v263_v6 = vld [vmem:[#allocation2 + $0x3d0] sm:$0xff]  ;;  %v2912_v7 = vpack.c.bf16 %v1211_v4, %v1209_v2  ;;  %v1208_v9 = vld [vmem:[#allocation2 + $0x500] sm:$0xff]  ;;  %v266_v11 = vld [vmem:[#allocation2 + $0x3e8] sm:$0xff]  ;;  %s143_s28 = sshra.s32 %s142_s27, 3 }
  0x2f   : > { %v2754_v8 = vpack.c.bf16 %v263_v6, %v261_v5  ;;  %v1210_v10 = vld [vmem:[#allocation2 + $0x510] sm:$0xff]  ;;  %2753 = vmatprep.subr.bf16.mxu1 %v2752_v3  ;;  %v268_v13 = vld [vmem:[#allocation2 + $0x3f8] sm:$0xff]  ;;  %v1213_v14 = vld [vmem:[#allocation2 + $0x528] sm:$0xff]  ;;  %s2749_s29 = sshll.u32 %s143_s28, 4  ;;  %p136_p2 = scmp.lt.s32.totalorder %s135_s5, 27 }
  0x30   : > { %v2914_v12 = vpack.c.bf16 %v1210_v10, %v1208_v9  ;;  %v1215_v15 = vld [vmem:[#allocation2 + $0x538] sm:$0xff]  ;;  %2913 = vmatprep.subr.bf16.mxu0 %v2912_v7  ;;  %v2756_v16 = vpack.c.bf16 %v268_v13, %v266_v11  ;;  %v265_v18 = vld [vmem:[#allocation2 + $0x3e0] sm:$0xff]  ;;  %v267_v19 = vld [vmem:[#allocation2 + $0x3f0] sm:$0xff]  ;;  %s3484_s4 = scalar_lea.vmem %s4277_s0, %s2749_s29 }
  0x31   : > { %2755 = vmatpush1.bf16.msra.mxu1 %v2754_v8  ;;  %v2916_v17 = vpack.c.bf16 %v1215_v15, %v1213_v14  ;;  %v1212_v20 = vld [vmem:[#allocation2 + $0x520] sm:$0xff]  ;;  %v2758_v21 = vpack.c.bf16 %v267_v19, %v265_v18  ;;  %v1214_v22 = vld [vmem:[#allocation2 + $0x530] sm:$0xff]  ;;  %v270_v23 = vld [vmem:[#allocation2 + $0x408] sm:$0xff]  ;;  %s4378_s5 = smov (!%p136_p2, %s135_s5), 27 }
  0x32   : > { %2915 = vmatpush1.bf16.msra.mxu0 %v2914_v12  ;;  %v272_v24 = vld [vmem:[#allocation2 + $0x418] sm:$0xff]  ;;  %2757 = vmatprep.subr.bf16.mxu1 %v2756_v16  ;;  %v2918_v25 = vpack.c.bf16 %v1214_v22, %v1212_v20  ;;  %v1217_v27 = vld [vmem:[#allocation2 + $0x548] sm:$0xff]  ;;  %v269_v29 = vld [vmem:[#allocation2 + $0x400] sm:$0xff]  ;;  %s2748_s6 = sshll.u32 %s4378_s5, 4 }
  0x33   : > { %2917 = vmatprep.subr.bf16.mxu0 %v2916_v17  ;;  %v2760_v26 = vpack.c.bf16 %v272_v24, %v270_v23  ;;  %v1219_v28 = vld [vmem:[#allocation2 + $0x558] sm:$0xff]  ;;  %v271_v31 = vld [vmem:[#allocation2 + $0x410] sm:$0xff]  ;;  %v1216_v32 = vld [vmem:[#allocation2 + $0x540] sm:$0xff]  ;;  %s4208_s10 = scalar_lea.vmem %s4279_s2, %s2748_s6 }
  0x34   : > { %v2920_v30 = vpack.c.bf16 %v1219_v28, %v1217_v27  ;;  %v1218_v33 = vld [vmem:[#allocation2 + $0x550] sm:$0xff]  ;;  %v2762_v34 = vpack.c.bf16 %v271_v31, %v269_v29  ;;  %v274_v35 = vld [vmem:[#allocation2 + $0x428] sm:$0xff]  ;;  %v276_v36 = vld [vmem:[#allocation2 + $0x438] sm:$0xff] }
  0x35   : > { %2759 = vmatpush1.bf16.msra.mxu1 %v2758_v21  ;;  %v1221_v37 = vld [vmem:[#allocation2 + $0x568] sm:$0xff]  ;;  %v2922_v38 = vpack.c.bf16 %v1218_v33, %v1216_v32  ;;  %v2764_v39 = vpack.c.bf16 %v276_v36, %v274_v35  ;;  %v1223_v40 = vld [vmem:[#allocation2 + $0x578] sm:$0xff]  ;;  %v273_v41 = vld [vmem:[#allocation2 + $0x420] sm:$0xff] }
  0x36   : > { %2919 = vmatpush1.bf16.msra.mxu0 %v2918_v25  ;;  %2761 = vmatprep.subr.bf16.mxu1 %v2760_v26  ;;  %v275_v42 = vld [vmem:[#allocation2 + $0x430] sm:$0xff]  ;;  %v2924_v43 = vpack.c.bf16 %v1223_v40, %v1221_v37  ;;  %v1220_v44 = vld [vmem:[#allocation2 + $0x560] sm:$0xff]  ;;  %v278_v46 = vld [vmem:[#allocation2 + $0x448] sm:$0xff] }
  0x37   : > { %2921 = vmatprep.subr.bf16.mxu0 %v2920_v30  ;;  %v1222_v45 = vld [vmem:[#allocation2 + $0x570] sm:$0xff]  ;;  %v280_v47 = vld [vmem:[#allocation2 + $0x458] sm:$0xff]  ;;  %v1225_v48 = vld [vmem:[#allocation2 + $0x588] sm:$0xff]  ;;  %v2766_v50 = vpack.c.bf16 %v275_v42, %v273_v41 }
  0x38   : > { %v1227_v49 = vld [vmem:[#allocation2 + $0x598] sm:$0xff]  ;;  %v2926_v51 = vpack.c.bf16 %v1222_v45, %v1220_v44  ;;  %v2768_v52 = vpack.c.bf16 %v280_v47, %v278_v46  ;;  %v277_v53 = vld [vmem:[#allocation2 + $0x440] sm:$0xff]  ;;  %v279_v54 = vld [vmem:[#allocation2 + $0x450] sm:$0xff] }
  0x39   : > { %2763 = vmatpush1.bf16.msra.mxu1 %v2762_v34  ;;  %v1224_v55 = vld [vmem:[#allocation2 + $0x580] sm:$0xff]  ;;  %v2928_v56 = vpack.c.bf16 %v1227_v49, %v1225_v48  ;;  %v1226_v57 = vld [vmem:[#allocation2 + $0x590] sm:$0xff]  ;;  %v282_v58 = vld [vmem:[#allocation2 + $0x468] sm:$0xff]  ;;  %v2770_v62 = vpack.c.bf16 %v279_v54, %v277_v53 }
  0x3a   : > { %2923 = vmatpush1.bf16.msra.mxu0 %v2922_v38  ;;  %2765 = vmatprep.subr.bf16.mxu1 %v2764_v39  ;;  %v284_v59 = vld [vmem:[#allocation2 + $0x478] sm:$0xff]  ;;  %v1229_v60 = vld [vmem:[#allocation2 + $0x5a8] sm:$0xff]  ;;  %v2930_v63 = vpack.c.bf16 %v1226_v57, %v1224_v55  ;;  %v281_v1 = vld [vmem:[#allocation2 + $0x460] sm:$0xff] }
  0x3b   : > { %2925 = vmatprep.subr.bf16.mxu0 %v2924_v43  ;;  %v1231_v61 = vld [vmem:[#allocation2 + $0x5b8] sm:$0xff]  ;;  %v2772_v0 = vpack.c.bf16 %v284_v59, %v282_v58  ;;  %v283_v2 = vld [vmem:[#allocation2 + $0x470] sm:$0xff]  ;;  %v1228_v3 = vld [vmem:[#allocation2 + $0x5a0] sm:$0xff] }
  0x3c   : > { %v2932_v4 = vpack.c.bf16 %v1231_v61, %v1229_v60  ;;  %v1230_v5 = vld [vmem:[#allocation2 + $0x5b0] sm:$0xff]  ;;  %v286_v6 = vld [vmem:[#allocation2 + $0x488] sm:$0xff]  ;;  %v288_v7 = vld [vmem:[#allocation2 + $0x498] sm:$0xff]  ;;  %v2774_v10 = vpack.c.bf16 %v283_v2, %v281_v1 }
  0x3d   : > { %2767 = vmatpush1.bf16.msra.mxu1 %v2766_v50  ;;  %v1233_v8 = vld [vmem:[#allocation2 + $0x5c8] sm:$0xff]  ;;  %v1235_v9 = vld [vmem:[#allocation2 + $0x5d8] sm:$0xff]  ;;  %v2934_v11 = vpack.c.bf16 %v1230_v5, %v1228_v3  ;;  %v2776_v12 = vpack.c.bf16 %v288_v7, %v286_v6  ;;  %v285_v13 = vld [vmem:[#allocation2 + $0x480] sm:$0xff] }
  0x3e   : > { %2927 = vmatpush1.bf16.msra.mxu0 %v2926_v51  ;;  %2769 = vmatprep.subr.bf16.mxu1 %v2768_v52  ;;  %v287_v14 = vld [vmem:[#allocation2 + $0x490] sm:$0xff]  ;;  %v1232_v15 = vld [vmem:[#allocation2 + $0x5c0] sm:$0xff]  ;;  %v2936_v16 = vpack.c.bf16 %v1235_v9, %v1233_v8  ;;  %v290_v18 = vld [vmem:[#allocation2 + $0x4a8] sm:$0xff] }
  0x3f   : > { %2929 = vmatprep.subr.bf16.mxu0 %v2928_v56  ;;  %v1234_v17 = vld [vmem:[#allocation2 + $0x5d0] sm:$0xff]  ;;  %v292_v19 = vld [vmem:[#allocation2 + $0x4b8] sm:$0xff]  ;;  %v1237_v20 = vld [vmem:[#allocation2 + $0x5e8] sm:$0xff]  ;;  %v2778_v22 = vpack.c.bf16 %v287_v14, %v285_v13 }
  0x40   : > { %v1239_v21 = vld [vmem:[#allocation2 + $0x5f8] sm:$0xff]  ;;  %v289_v23 = vld [vmem:[#allocation2 + $0x4a0] sm:$0xff]  ;;  %v2938_v24 = vpack.c.bf16 %v1234_v17, %v1232_v15  ;;  %v2780_v25 = vpack.c.bf16 %v292_v19, %v290_v18  ;;  %v291_v26 = vld [vmem:[#allocation2 + $0x4b0] sm:$0xff] }
  0x41   : > { %2771 = vmatpush1.bf16.msra.mxu1 %v2770_v62  ;;  %v1236_v27 = vld [vmem:[#allocation2 + $0x5e0] sm:$0xff]  ;;  %v1238_v28 = vld [vmem:[#allocation2 + $0x5f0] sm:$0xff]  ;;  %v2940_v29 = vpack.c.bf16 %v1239_v21, %v1237_v20  ;;  %v294_v30 = vld [vmem:[#allocation2 + $0x4c8] sm:$0xff]  ;;  %v2782_v37 = vpack.c.bf16 %v291_v26, %v289_v23 }
  0x42   : > { %2931 = vmatpush1.bf16.msra.mxu0 %v2930_v63  ;;  %2773 = vmatprep.subr.bf16.mxu1 %v2772_v0  ;;  %v296_v31 = vld [vmem:[#allocation2 + $0x4d8] sm:$0xff]  ;;  %v3487_v32 = vld [vmem:[%s3484_s4 + $0x28] sm:$0xff]  ;;  %v2942_v39 = vpack.c.bf16 %v1238_v28, %v1236_v27  ;;  %v293_v41 = vld [vmem:[#allocation2 + $0x4c0] sm:$0xff] }
  0x43   : > { %2933 = vmatprep.subr.bf16.mxu0 %v2932_v4  ;;  %v1241_v33 = vld [vmem:[#allocation2 + $0x608] sm:$0xff]  ;;  %v1243_v34 = vld [vmem:[#allocation2 + $0x618] sm:$0xff]  ;;  %v4291_v35 = vmax.f32 %v3487_v32, 0.0  ;;  %v2784_v40 = vpack.c.bf16 %v296_v31, %v294_v30  ;;  %v295_v42 = vld [vmem:[#allocation2 + $0x4d0] sm:$0xff] }
  0x44   : > { %v3491_v36 = vld [vmem:[%s3484_s4 + $0x228] sm:$0xff]  ;;  %v1240_v43 = vld [vmem:[#allocation2 + $0x600] sm:$0xff]  ;;  %v2944_v44 = vpack.c.bf16 %v1243_v34, %v1241_v33  ;;  %v1242_v45 = vld [vmem:[#allocation2 + $0x610] sm:$0xff]  ;;  %v2786_v50 = vpack.c.bf16 %v295_v42, %v293_v41 }
  0x45   : > { %2775 = vmatpush1.bf16.msra.mxu1 %v2774_v10  ;;  %4325 = vst [vmem:[#allocation5_spill] sm:$0xff] %v3491_v36  ;;  %v4285_v38 = vmax.f32 %v3491_v36, 0.0  ;;  %v298_v46 = vld [vmem:[#allocation2 + $0x4e8] sm:$0xff]  ;;  %v300_v47 = vld [vmem:[#allocation2 + $0x4f8] sm:$0xff]  ;;  %2544 = vmatprep.mubr.msk.f32.mxu1 %vm301_vm0, %v4291_v35  ;;  %v2946_v51 = vpack.c.bf16 %v1242_v45, %v1240_v43  ;;  %v297_v53 = vld [vmem:[#allocation2 + $0x4e0] sm:$0xff] }
  0x46   : > { %2935 = vmatpush1.bf16.msra.mxu0 %v2934_v11  ;;  %2777 = vmatprep.subr.bf16.mxu1 %v2776_v12  ;;  %v1245_v48 = vld [vmem:[#allocation2 + $0x628] sm:$0xff]  ;;  %v1247_v49 = vld [vmem:[#allocation2 + $0x638] sm:$0xff]  ;;  %v2788_v52 = vpack.c.bf16 %v300_v47, %v298_v46  ;;  %v299_v54 = vld [vmem:[#allocation2 + $0x4f0] sm:$0xff] }
  0x47   : > { %2937 = vmatprep.subr.bf16.mxu0 %v2936_v16  ;;  %2638 = vmatprep.mubr.msk.f32.mxu0 %vm301_vm0, %v4285_v38  ;;  %v1244_v55 = vld [vmem:[#allocation2 + $0x620] sm:$0xff]  ;;  %v2948_v56 = vpack.c.bf16 %v1247_v49, %v1245_v48  ;;  %v1246_v57 = vld [vmem:[#allocation2 + $0x630] sm:$0xff]  ;;  %v221_v58 = vld [vmem:[#allocation2 + $0x8] sm:$0xff]  ;;  %v2790_v62 = vpack.c.bf16 %v299_v54, %v297_v53 }
  0x48   : > { %v223_v59 = vld [vmem:[#allocation2 + $0x18] sm:$0xff]  ;;  %v1433_v60 = vld [vmem:[#allocation2 + $0x8c8] sm:$0xff]  ;;  %v3501_v63 = vld [vmem:[%s3484_s4 + $0x20] sm:$0xff]  ;;  %v2950_v0 = vpack.c.bf16 %v1246_v57, %v1244_v55 }
  0x49   : > { %2779 = vmatpush1.bf16.msra.mxu1 %v2778_v22  ;;  %v1435_v61 = vld [vmem:[#allocation2 + $0x8d8] sm:$0xff]  ;;  %v2792_v1 = vpack.c.bf16 %v223_v59, %v221_v58  ;;  %v3504_v2 = vld [vmem:[%s3484_s4 + $0x220] sm:$0xff]  ;;  %v222_v4 = vld [vmem:[#allocation2 + $0x10] sm:$0xff]  ;;  %v4288_v9 = vmax.f32 %v3501_v63, 0.0 }
  0x4a   : > { %2939 = vmatpush1.bf16.msra.mxu0 %v2938_v24  ;;  %2781 = vmatprep.subr.bf16.mxu1 %v2780_v25  ;;  %4326 = vst [vmem:[#allocation6_spill] sm:$0xff] %v3504_v2  ;;  %v220_v3 = vld [vmem:[#allocation2] sm:$0xff]  ;;  %v2952_v5 = vpack.c.bf16 %v1435_v61, %v1433_v60  ;;  %v1434_v7 = vld [vmem:[#allocation2 + $0x8d0] sm:$0xff]  ;;  %v3507_v8 = vld [vmem:[%s3484_s4 + $0x38] sm:$0xff]  ;;  %v4284_v13 = vmax.f32 %v3504_v2, 0.0 }
  0x4b   : > { %2941 = vmatprep.subr.bf16.mxu0 %v2940_v29  ;;  %v1432_v6 = vld [vmem:[#allocation2 + $0x8c0] sm:$0xff]  ;;  %v3511_v10 = vld [vmem:[%s3484_s4 + $0x238] sm:$0xff]  ;;  %v225_v11 = vld [vmem:[#allocation2 + $0x28] sm:$0xff]  ;;  %v2794_v14 = vpack.c.bf16 %v222_v4, %v220_v3  ;;  %v4287_v19 = vmax.f32 %v3507_v8, 0.0 }
  0x4c   : > { %4327 = vst [vmem:[#allocation7_spill] sm:$0xff] %v3511_v10  ;;  %v227_v12 = vld [vmem:[#allocation2 + $0x38] sm:$0xff]  ;;  %v3515_v15 = vld [vmem:[%s3484_s4 + $0x30] sm:$0xff]  ;;  %v1437_v16 = vld [vmem:[#allocation2 + $0x8e8] sm:$0xff]  ;;  %v2954_v18 = vpack.c.bf16 %v1434_v7, %v1432_v6  ;;  %v4283_v23 = vmax.f32 %v3511_v10, 0.0 }
  0x4d   : > { %2783 = vmatpush1.bf16.msra.mxu1 %v2782_v37  ;;  %v1439_v17 = vld [vmem:[#allocation2 + $0x8f8] sm:$0xff]  ;;  %v3519_v20 = vld [vmem:[%s3484_s4 + $0x230] sm:$0xff]  ;;  %v157_v21 = vld [vmem:[%s3484_s4 + $0x48] sm:$0xff]  ;;  %v2796_v24 = vpack.c.bf16 %v227_v12, %v225_v11  ;;  %v4286_v28 = vmax.f32 %v3515_v15, 0.0 }
  0x4e   : > { %2943 = vmatpush1.bf16.msra.mxu0 %v2942_v39  ;;  %2785 = vmatprep.subr.bf16.mxu1 %v2784_v40  ;;  %4328 = vst [vmem:[#allocation8_spill] sm:$0xff] %v3519_v20  ;;  %v224_v22 = vld [vmem:[#allocation2 + $0x20] sm:$0xff]  ;;  %v226_v25 = vld [vmem:[#allocation2 + $0x30] sm:$0xff]  ;;  %v2597_v26 = vld [vmem:[%s3484_s4 + $0x248] sm:$0xff]  ;;  %v2956_v29 = vpack.c.bf16 %v1439_v17, %v1437_v16  ;;  %v4282_v34 = vmax.f32 %v3519_v20, 0.0  ;;  %v3530_v37 = vmax.f32 %v157_v21, 0.0 }
  0x4f   : > { %2945 = vmatprep.subr.bf16.mxu0 %v2944_v44  ;;  %v1436_v27 = vld [vmem:[#allocation2 + $0x8e0] sm:$0xff]  ;;  %v1438_v30 = vld [vmem:[#allocation2 + $0x8f0] sm:$0xff]  ;;  %v229_v31 = vld [vmem:[#allocation2 + $0x48] sm:$0xff]  ;;  %v2798_v42 = vpack.c.bf16 %v226_v25, %v224_v22  ;;  %v3536_v43 = vmax.f32 %v2597_v26, 0.0 }
  0x50   : > { %v231_v33 = vld [vmem:[#allocation2 + $0x58] sm:$0xff]  ;;  %v156_v39 = vld [vmem:[%s3484_s4 + $0x40] sm:$0xff]  ;;  %v1441_v40 = vld [vmem:[#allocation2 + $0x908] sm:$0xff]  ;;  %v2958_v47 = vpack.c.bf16 %v1438_v30, %v1436_v27 }
  0x51   : > { %2787 = vmatpush1.bf16.msra.mxu1 %v2786_v50  ;;  %v1443_v41 = vld [vmem:[#allocation2 + $0x918] sm:$0xff]  ;;  %v2596_v44 = vld [vmem:[%s3484_s4 + $0x240] sm:$0xff]  ;;  %v2800_v48 = vpack.c.bf16 %v231_v33, %v229_v31  ;;  %v230_v50 = vld [vmem:[#allocation2 + $0x50] sm:$0xff] }
  0x52   : > { %2947 = vmatpush1.bf16.msra.mxu0 %v2946_v51  ;;  %2789 = vmatprep.subr.bf16.mxu1 %v2788_v52  ;;  %v159_v45 = vld [vmem:[%s3484_s4 + $0x58] sm:$0xff]  ;;  %v228_v49 = vld [vmem:[#allocation2 + $0x40] sm:$0xff]  ;;  %v3546_v52 = vmax.f32 %v156_v39, 0.0  ;;  %v2960_v53 = vpack.c.bf16 %v1443_v41, %v1441_v40  ;;  %v1442_v54 = vld [vmem:[#allocation2 + $0x910] sm:$0xff]  ;;  %v3552_v57 = vmax.f32 %v2596_v44, 0.0 }
  0x53   : > { %2949 = vmatprep.subr.bf16.mxu0 %v2948_v56  ;;  %v2599_v46 = vld [vmem:[%s3484_s4 + $0x258] sm:$0xff]  ;;  %v1440_v51 = vld [vmem:[#allocation2 + $0x900] sm:$0xff]  ;;  %v233_v55 = vld [vmem:[#allocation2 + $0x68] sm:$0xff]  ;;  %v3554_v58 = vmax.f32 %v159_v45, 0.0 }
  0x54   : > { %v235_v56 = vld [vmem:[#allocation2 + $0x78] sm:$0xff]  ;;  %v158_v59 = vld [vmem:[%s3484_s4 + $0x50] sm:$0xff]  ;;  %v1445_v60 = vld [vmem:[#allocation2 + $0x928] sm:$0xff] }
  0x55   : > { %2791 = vmatpush1.bf16.msra.mxu1 %v2790_v62  ;;  %v1447_v61 = vld [vmem:[#allocation2 + $0x938] sm:$0xff]  ;;  %v3559_v62 = vmax.f32 %v2599_v46, 0.0  ;;  %v161_v3 = vld [vmem:[%s3484_s4 + $0x68] sm:$0xff]  ;;  %v2804_v6 = vpack.c.bf16 %v235_v56, %v233_v55  ;;  %v232_v7 = vld [vmem:[#allocation2 + $0x60] sm:$0xff] }
  0x56   : > { %2951 = vmatpush1.bf16.msra.mxu0 %v2950_v0  ;;  %2793 = vmatprep.subr.bf16.mxu1 %v2792_v1  ;;  %v2598_v0 = vld [vmem:[%s3484_s4 + $0x250] sm:$0xff]  ;;  %v2802_v1 = vpack.c.bf16 %v230_v50, %v228_v49  ;;  %v2601_v4 = vld [vmem:[%s3484_s4 + $0x268] sm:$0xff]  ;;  %v1444_v12 = vld [vmem:[#allocation2 + $0x920] sm:$0xff]  ;;  %v2964_v16 = vpack.c.bf16 %v1447_v61, %v1445_v60 }
  0x57   : > { %2953 = vmatprep.subr.bf16.mxu0 %v2952_v5  ;;  %v2962_v5 = vpack.c.bf16 %v1442_v54, %v1440_v51  ;;  %v234_v11 = vld [vmem:[#allocation2 + $0x70] sm:$0xff]  ;;  %v239_v21 = vld [vmem:[#allocation2 + $0x98] sm:$0xff]  ;;  %v3570_v22 = vmax.f32 %v2598_v0, 0.0  ;;  %v160_v25 = vld [vmem:[%s3484_s4 + $0x60] sm:$0xff] }
  0x58   : > { %409 = vmatmul.mubr.f32.vlgmr.msra.gmra.mrb[0].mxu1 %v4288_v9  ;;  %v1446_v17 = vld [vmem:[#allocation2 + $0x930] sm:$0xff]  ;;  %v1449_v26 = vld [vmem:[#allocation2 + $0x948] sm:$0xff]  ;;  %v1451_v27 = vld [vmem:[#allocation2 + $0x958] sm:$0xff]  ;;  %v2806_v31 = vpack.c.bf16 %v234_v11, %v232_v7  ;;  %v3583_v46 = vmax.f32 %v160_v25, 0.0 }
  0x59   : > { %1319 = vmatmul.mubr.f32.vlgmr.msra.gmra.mrb[0].mxu0 %v4284_v13  ;;  %2795 = vmatpush1.bf16.msra.mxu1 %v2794_v14  ;;  %v3565_v14 = vmax.f32 %v158_v59, 0.0  ;;  %v2600_v30 = vld [vmem:[%s3484_s4 + $0x260] sm:$0xff]  ;;  %v163_v33 = vld [vmem:[%s3484_s4 + $0x78] sm:$0xff]  ;;  %v2966_v40 = vpack.c.bf16 %v1446_v17, %v1444_v12  ;;  %v238_v44 = vld [vmem:[#allocation2 + $0x90] sm:$0xff] }
  0x5a   : > { %2955 = vmatpush1.bf16.msra.mxu0 %v2954_v18  ;;  %2545 = vmatprep.mubr.msk.f32.mxu1 %vm301_vm0, %v4287_v19  ;;  %v237_v18 = vld [vmem:[#allocation2 + $0x88] sm:$0xff]  ;;  %v2603_v39 = vld [vmem:[%s3484_s4 + $0x278] sm:$0xff]  ;;  %v1448_v45 = vld [vmem:[#allocation2 + $0x940] sm:$0xff]  ;;  %v3588_v51 = vmax.f32 %v2600_v30, 0.0 }
  0x5b   : > { %2639 = vmatprep.mubr.msk.f32.mxu0 %vm301_vm0, %v4283_v23  ;;  %2797 = vmatprep.subr.bf16.mxu1 %v2796_v24  ;;  %v3572_v24 = vmax.f32 %v161_v3, 0.0  ;;  %v2808_v41 = vpack.c.bf16 %v239_v21, %v237_v18  ;;  %v241_v49 = vld [vmem:[#allocation2 + $0xa8] sm:$0xff]  ;;  %v243_v50 = vld [vmem:[#allocation2 + $0xb8] sm:$0xff]  ;;  %v162_v54 = vld [vmem:[%s3484_s4 + $0x70] sm:$0xff]  ;;  %v3595_v59 = vmax.f32 %v2603_v39, 0.0 }
  0x5c   : > { %415 = vmatmul.mubr.f32.gmra.mrb[2].mxu1 %v4286_v28  ;;  %2957 = vmatprep.subr.bf16.mxu0 %v2956_v29  ;;  %v3577_v29 = vmax.f32 %v2601_v4, 0.0  ;;  %v1453_v55 = vld [vmem:[#allocation2 + $0x968] sm:$0xff]  ;;  %v1455_v56 = vld [vmem:[#allocation2 + $0x978] sm:$0xff]  ;;  %v2602_v60 = vld [vmem:[%s3484_s4 + $0x270] sm:$0xff]  ;;  %v2812_v4 = vpack.c.bf16 %v243_v50, %v241_v49  ;;  %v3601_v11 = vmax.f32 %v162_v54, 0.0 }
  0x5d   : > { %1325 = vmatmul.mubr.f32.gmra.mrb[2].mxu0 %v4282_v34  ;;  %2546 = vmatprep.mubr.msk.f32.mxu1 %vm301_vm0, %v3530_v37  ;;  %v165_v61 = vld [vmem:[%s3484_s4 + $0x88] sm:$0xff]  ;;  %v1452_v7 = vld [vmem:[#allocation2 + $0x960] sm:$0xff]  ;;  %v2972_v12 = vpack.c.bf16 %v1455_v56, %v1453_v55  ;;  %v247_v18 = vld [vmem:[#allocation2 + $0xd8] sm:$0xff]  ;;  %v3606_v21 = vmax.f32 %v2602_v60, 0.0 }
  0x5e   : > { %2799 = vmatpush1.bf16.msra.mxu1 %v2798_v42  ;;  %2640 = vmatprep.mubr.msk.f32.mxu0 %vm301_vm0, %v3536_v43  ;;  %v236_v42 = vld [vmem:[#allocation2 + $0x80] sm:$0xff]  ;;  %v2605_v0 = vld [vmem:[%s3484_s4 + $0x288] sm:$0xff]  ;;  %v3608_v25 = vmax.f32 %v165_v61, 0.0  ;;  %v1459_v30 = vld [vmem:[#allocation2 + $0x998] sm:$0xff] }
  0x5f   : > { %2959 = vmatpush1.bf16.msra.mxu0 %v2958_v47  ;;  %2801 = vmatprep.subr.bf16.mxu1 %v2800_v48  ;;  %v2968_v47 = vpack.c.bf16 %v1451_v27, %v1449_v26  ;;  %v1450_v48 = vld [vmem:[#allocation2 + $0x950] sm:$0xff]  ;;  %v245_v17 = vld [vmem:[#allocation2 + $0xc8] sm:$0xff]  ;;  %v164_v26 = vld [vmem:[%s3484_s4 + $0x80] sm:$0xff] }
  0x60   : > { %421 = vmatmul.mubr.f32.gmra.mrb[4].mxu1 %v3546_v52  ;;  %2961 = vmatprep.subr.bf16.mxu0 %v2960_v53  ;;  %v3590_v53 = vmax.f32 %v163_v33, 0.0  ;;  %v2970_v3 = vpack.c.bf16 %v1450_v48, %v1448_v45  ;;  %v1457_v27 = vld [vmem:[#allocation2 + $0x988] sm:$0xff]  ;;  %v2604_v33 = vld [vmem:[%s3484_s4 + $0x280] sm:$0xff]  ;;  %v167_v39 = vld [vmem:[%s3484_s4 + $0x98] sm:$0xff]  ;;  %v3619_v49 = vmax.f32 %v164_v26, 0.0 }
  0x61   : > { %1331 = vmatmul.mubr.f32.gmra.mrb[4].mxu0 %v3552_v57  ;;  %2547 = vmatprep.mubr.msk.f32.mxu1 %vm301_vm0, %v3554_v58  ;;  %v244_v45 = vld [vmem:[#allocation2 + $0xc0] sm:$0xff]  ;;  %v2976_v50 = vpack.c.bf16 %v1459_v30, %v1457_v27  ;;  %v1458_v54 = vld [vmem:[#allocation2 + $0x990] sm:$0xff]  ;;  %v249_v55 = vld [vmem:[#allocation2 + $0xe8] sm:$0xff]  ;;  %v3624_v60 = vmax.f32 %v2604_v33, 0.0  ;;  %v3626_v61 = vmax.f32 %v167_v39, 0.0 }
  0x62   : > { %2641 = vmatprep.mubr.msk.f32.mxu0 %vm301_vm0, %v3559_v62  ;;  %2803 = vmatpush1.bf16.msra.mxu1 %v2802_v1  ;;  %v2810_v1 = vpack.c.bf16 %v238_v44, %v236_v42  ;;  %v2816_v44 = vpack.c.bf16 %v247_v18, %v245_v17  ;;  %v1456_v48 = vld [vmem:[#allocation2 + $0x980] sm:$0xff]  ;;  %v251_v56 = vld [vmem:[#allocation2 + $0xf8] sm:$0xff]  ;;  %v250_v26 = vld [vmem:[#allocation2 + $0xf0] sm:$0xff] }
  0x63   : > { %2963 = vmatpush1.bf16.msra.mxu0 %v2962_v5  ;;  %2805 = vmatprep.subr.bf16.mxu1 %v2804_v6  ;;  %v240_v5 = vld [vmem:[#allocation2 + $0xa0] sm:$0xff]  ;;  %v242_v6 = vld [vmem:[#allocation2 + $0xb0] sm:$0xff]  ;;  %v2820_v17 = vpack.c.bf16 %v251_v56, %v249_v55  ;;  %v171_v55 = vld [vmem:[%s3484_s4 + $0xb8] sm:$0xff] }
  0x64   : > { %427 = vmatmul.mubr.f32.gmra.mrb[6].mxu1 %v3565_v14  ;;  %2965 = vmatprep.subr.bf16.mxu0 %v2964_v16  ;;  %v1454_v16 = vld [vmem:[#allocation2 + $0x970] sm:$0xff]  ;;  %v248_v18 = vld [vmem:[#allocation2 + $0xe0] sm:$0xff]  ;;  %v2611_v56 = vld [vmem:[%s3484_s4 + $0x2b8] sm:$0xff] }
  0x65   : > { %1337 = vmatmul.mubr.f32.gmra.mrb[6].mxu0 %v3570_v22  ;;  %2548 = vmatprep.mubr.msk.f32.mxu1 %vm301_vm0, %v3572_v24  ;;  %v2974_v42 = vpack.c.bf16 %v1454_v16, %v1452_v7  ;;  %v2609_v7 = vld [vmem:[%s3484_s4 + $0x2a8] sm:$0xff]  ;;  %v2978_v16 = vpack.c.bf16 %v1458_v54, %v1456_v48  ;;  %v1460_v27 = vld [vmem:[#allocation2 + $0x9a0] sm:$0xff]  ;;  %v1462_v39 = vld [vmem:[#allocation2 + $0x9b0] sm:$0xff] }
  0x66   : > { %2642 = vmatprep.mubr.msk.f32.mxu0 %vm301_vm0, %v3577_v29  ;;  %2807 = vmatpush1.bf16.msra.mxu1 %v2806_v31  ;;  %v3613_v31 = vmax.f32 %v2605_v0, 0.0  ;;  %v166_v0 = vld [vmem:[%s3484_s4 + $0x90] sm:$0xff]  ;;  %v1467_v48 = vld [vmem:[#allocation2 + $0x9d8] sm:$0xff]  ;;  %v2608_v54 = vld [vmem:[%s3484_s4 + $0x2a0] sm:$0xff] }
  0x67   : > { %2967 = vmatpush1.bf16.msra.mxu0 %v2966_v40  ;;  %2809 = vmatprep.subr.bf16.mxu1 %v2808_v41  ;;  %v2607_v40 = vld [vmem:[%s3484_s4 + $0x298] sm:$0xff]  ;;  %v2814_v41 = vpack.c.bf16 %v242_v6, %v240_v5  ;;  %v2606_v5 = vld [vmem:[%s3484_s4 + $0x290] sm:$0xff]  ;;  %v169_v6 = vld [vmem:[%s3484_s4 + $0xa8] sm:$0xff]  ;;  %v3637_v30 = vmax.f32 %v166_v0, 0.0  ;;  %v2822_v0 = vpack.c.bf16 %v250_v26, %v248_v18 }
  0x68   : > { %433 = vmatmul.mubr.f32.gmra.mrb[8].mxu1 %v3583_v46  ;;  %2969 = vmatprep.subr.bf16.mxu0 %v2968_v47  ;;  %v246_v47 = vld [vmem:[#allocation2 + $0xd0] sm:$0xff]  ;;  %v1464_v34 = vld [vmem:[#allocation2 + $0x9c0] sm:$0xff]  ;;  %v257_v13 = vld [vmem:[#allocation2 + $0x128] sm:$0xff] }
  0x69   : > { %1343 = vmatmul.mubr.f32.gmra.mrb[8].mxu0 %v3588_v51  ;;  %2549 = vmatprep.mubr.msk.f32.mxu1 %vm301_vm0, %v3590_v53  ;;  %v259_v18 = vld [vmem:[#allocation2 + $0x138] sm:$0xff]  ;;  %v170_v26 = vld [vmem:[%s3484_s4 + $0xb0] sm:$0xff]  ;;  %v1468_v28 = vld [vmem:[#allocation2 + $0x9e0] sm:$0xff] }
  0x6a   : > { %2643 = vmatprep.mubr.msk.f32.mxu0 %vm301_vm0, %v3595_v59  ;;  %2811 = vmatpush1.bf16.msra.mxu1 %v2810_v1  ;;  %v1461_v1 = vld [vmem:[#allocation2 + $0x9a8] sm:$0xff]  ;;  %v258_v38 = vld [vmem:[#allocation2 + $0x130] sm:$0xff]  ;;  %v3673_v19 = vmax.f32 %v170_v26, 0.0  ;;  %v649_v10 = vld [vmem:[#allocation2 + $0x780] sm:$0xff] }
  0x6b   : > { %2971 = vmatpush1.bf16.msra.mxu0 %v2970_v3  ;;  %2813 = vmatprep.subr.bf16.mxu1 %v2812_v4  ;;  %v1463_v3 = vld [vmem:[#allocation2 + $0x9b8] sm:$0xff]  ;;  %v3631_v4 = vmax.f32 %v2607_v40, 0.0  ;;  %v253_v40 = vld [vmem:[#allocation2 + $0x108] sm:$0xff]  ;;  %v1470_v9 = vld [vmem:[#allocation2 + $0x9f0] sm:$0xff] }
  0x6c   : > { %439 = vmatmul.mubr.f32.gmra.mrb[10].mxu1 %v3601_v11  ;;  %2973 = vmatprep.subr.bf16.mxu0 %v2972_v12  ;;  %v2818_v12 = vpack.c.bf16 %v246_v47, %v244_v45  ;;  %v2980_v33 = vpack.c.bf16 %v1463_v3, %v1461_v1  ;;  %v168_v45 = vld [vmem:[%s3484_s4 + $0xa0] sm:$0xff]  ;;  %v1465_v47 = vld [vmem:[#allocation2 + $0x9c8] sm:$0xff]  ;;  %v2982_v1 = vpack.c.bf16 %v1462_v39, %v1460_v27  ;;  %v1471_v39 = vld [vmem:[#allocation2 + $0x9f8] sm:$0xff] }
  0x6d   : > { %1349 = vmatmul.mubr.f32.gmra.mrb[10].mxu0 %v3606_v21  ;;  %2550 = vmatprep.mubr.msk.f32.mxu1 %vm301_vm0, %v3608_v25  ;;  %v3655_v23 = vmax.f32 %v168_v45, 0.0  ;;  %v1469_v27 = vld [vmem:[#allocation2 + $0x9e8] sm:$0xff]  ;;  %4330 = vst [vmem:[#allocation10_spill] sm:$0xff] %v3673_v19  ;;  %v1731_v2 = vld [vmem:[#allocation2 + $0x280] sm:$0xff]  ;;  %v151_v36 = vld [vmem:[%s3484_s4 + $0x18] sm:$0xff] }
  0x6e   : > { %2644 = vmatprep.mubr.msk.f32.mxu0 %vm301_vm0, %v3613_v31  ;;  %2815 = vmatpush1.bf16.msra.mxu1 %v2814_v41  ;;  %v255_v41 = vld [vmem:[#allocation2 + $0x118] sm:$0xff]  ;;  %v2613_v45 = vld [vmem:[%s3484_s4 + $0x2c8] sm:$0xff] }
  0x6f   : > { %2975 = vmatpush1.bf16.msra.mxu0 %v2974_v42  ;;  %2817 = vmatprep.subr.bf16.mxu1 %v2816_v44  ;;  %v3642_v42 = vmax.f32 %v2606_v5, 0.0  ;;  %v3644_v44 = vmax.f32 %v169_v6, 0.0  ;;  %v2824_v3 = vpack.c.bf16 %v255_v41, %v253_v40  ;;  %v252_v5 = vld [vmem:[#allocation2 + $0x100] sm:$0xff]  ;;  %v254_v6 = vld [vmem:[#allocation2 + $0x110] sm:$0xff]  ;;  %v173_v41 = vld [vmem:[%s3484_s4 + $0xc8] sm:$0xff] }
  0x70   : > { %445 = vmatmul.mubr.f32.gmra.mrb[12].mxu1 %v3619_v49  ;;  %2977 = vmatprep.subr.bf16.mxu0 %v2976_v50  ;;  %v3649_v50 = vmax.f32 %v2609_v7, 0.0  ;;  %v2984_v7 = vpack.c.bf16 %v1467_v48, %v1465_v47  ;;  %v2610_v40 = vld [vmem:[%s3484_s4 + $0x2b0] sm:$0xff]  ;;  %v2826_v47 = vpack.c.bf16 %v254_v6, %v252_v5  ;;  %v652_v5 = vld [vmem:[#allocation2 + $0x798] sm:$0xff] }
  0x71   : > { %1355 = vmatmul.mubr.f32.gmra.mrb[12].mxu0 %v3624_v60  ;;  %2551 = vmatprep.mubr.msk.f32.mxu1 %vm301_vm0, %v3626_v61  ;;  %v1734_v6 = vld [vmem:[#allocation2 + $0x298] sm:$0xff] }
  0x72   : > { %2645 = vmatprep.mubr.msk.f32.mxu0 %vm301_vm0, %v3631_v4  ;;  %2819 = vmatpush1.bf16.msra.mxu1 %v2818_v12  ;;  %v1466_v12 = vld [vmem:[#allocation2 + $0x9d0] sm:$0xff] }
  0x73   : > { %2979 = vmatpush1.bf16.msra.mxu0 %v2978_v16  ;;  %2821 = vmatprep.subr.bf16.mxu1 %v2820_v17  ;;  %v3660_v16 = vmax.f32 %v2608_v54, 0.0  ;;  %v3662_v17 = vmax.f32 %v171_v55, 0.0  ;;  %v2986_v48 = vpack.c.bf16 %v1466_v12, %v1464_v34  ;;  %v2828_v54 = vpack.c.bf16 %v259_v18, %v257_v13  ;;  %v256_v55 = vld [vmem:[#allocation2 + $0x120] sm:$0xff]  ;;  %v175_v18 = vld [vmem:[%s3484_s4 + $0xd8] sm:$0xff] }
  0x74   : > { %451 = vmatmul.mubr.f32.gmra.mrb[14].mxu1 %v3637_v30  ;;  %2981 = vmatprep.subr.bf16.mxu0 %v2980_v33  ;;  %v3667_v33 = vmax.f32 %v2611_v56, 0.0  ;;  %v2988_v56 = vpack.c.bf16 %v1471_v39, %v1469_v27  ;;  %v3678_v13 = vmax.f32 %v2610_v40, 0.0  ;;  %v3680_v34 = vmax.f32 %v173_v41, 0.0  ;;  %v2612_v12 = vld [vmem:[%s3484_s4 + $0x2c0] sm:$0xff]  ;;  %v2615_v27 = vld [vmem:[%s3484_s4 + $0x2d8] sm:$0xff] }
  0x75   : > { %1361 = vmatmul.mubr.f32.gmra.mrb[14].mxu0 %v3642_v42  ;;  %2552 = vmatprep.mubr.msk.f32.mxu1 %vm301_vm0, %v3644_v44  ;;  %4329 = vst [vmem:[#allocation9_spill] sm:$0xff] %v3662_v17  ;;  %v2830_v26 = vpack.c.bf16 %v258_v38, %v256_v55  ;;  %v2990_v39 = vpack.c.bf16 %v1470_v9, %v1468_v28  ;;  %v3696_v38 = vmax.f32 %v2612_v12, 0.0  ;;  %v3703_v9 = vmax.f32 %v2615_v27, 0.0  ;;  %v2614_v28 = vld [vmem:[%s3484_s4 + $0x2d0] sm:$0xff]  ;;  %v3710_v55 = vld [vmem:[%s3484_s4 + $0x2e8] sm:$0xff]  ;;  %v3731_v12 = vld [vmem:[%s3484_s4 + $0xf8] sm:$0xff] }
  0x76   : > { %2646 = vmatprep.mubr.msk.f32.mxu0 %vm301_vm0, %v3649_v50  ;;  %2823 = vmatpush1.bf16.msra.mxu1 %v2822_v0  ;;  %v650_v0 = vld [vmem:[#allocation2 + $0x788] sm:$0xff]  ;;  %4331 = vst [vmem:[#allocation11_spill] sm:$0xff] %v3680_v34  ;;  %4337 = vst [vmem:[#allocation17_spill] sm:$0xff] %v3731_v12 }
  0x77   : > { %2983 = vmatpush1.bf16.msra.mxu0 %v2982_v1  ;;  %2825 = vmatprep.subr.bf16.mxu1 %v2824_v3  ;;  %v172_v1 = vld [vmem:[%s3484_s4 + $0xc0] sm:$0xff]  ;;  %v1732_v3 = vld [vmem:[#allocation2 + $0x288] sm:$0xff]  ;;  %v2832_v40 = vpack.c.bf16 %v652_v5, %v650_v0  ;;  %v3718_v0 = vmax.f32 %v2614_v28, 0.0 }
  0x78   : > { %457 = vmatmul.mubr.f32.gmra.mrb[16].mxu1 %v3655_v23  ;;  %2985 = vmatprep.subr.bf16.mxu0 %v2984_v7  ;;  %v3685_v7 = vmax.f32 %v2613_v45, 0.0  ;;  %v3691_v41 = vmax.f32 %v172_v1, 0.0  ;;  %v2992_v45 = vpack.c.bf16 %v1734_v6, %v1732_v3  ;;  %v3722_v1 = vld [vmem:[%s3484_s4 + $0xe0] sm:$0xff]  ;;  %v4290_v3 = vmax.f32 %v3710_v55, 0.0  ;;  %v149_v28 = vld [vmem:[%s3484_s4 + $0x8] sm:$0xff] }
  0x79   : > { %1367 = vmatmul.mubr.f32.gmra.mrb[16].mxu0 %v3660_v16  ;;  %2553 = vmatprep.mubr.msk.f32.mxu1 %vm301_vm0, %v3662_v17  ;;  %4336 = vst [vmem:[#allocation16_spill] sm:$0xff] %v3722_v1  ;;  %v3728_v6 = vld [vmem:[%s3484_s4 + $0x2e0] sm:$0xff]  ;;  %v185_v35 = vmax.f32 %v149_v28, 0.0  ;;  %v660_v17 = vld [vmem:[#allocation2 + $0x7d8] sm:$0xff] }
  0x7a   : > { %2647 = vmatprep.mubr.msk.f32.mxu0 %vm301_vm0, %v3667_v33  ;;  %2827 = vmatpush1.bf16.msra.mxu1 %v2826_v47  ;;  %4332 = vst [vmem:[#allocation12_spill] sm:$0xff] %v3691_v41  ;;  %v3698_v47 = vmax.f32 %v175_v18, 0.0  ;;  %v3734_v18 = vld [vmem:[%s3484_s4 + $0x2f8] sm:$0xff]  ;;  %v4297_v27 = vmax.f32 %v3728_v6, 0.0 }
  0x7b   : > { %2987 = vmatpush1.bf16.msra.mxu0 %v2986_v48  ;;  %2829 = vmatprep.subr.bf16.mxu1 %v2828_v54  ;;  %v174_v48 = vld [vmem:[%s3484_s4 + $0xd0] sm:$0xff]  ;;  %v3707_v54 = vld [vmem:[%s3484_s4 + $0xe8] sm:$0xff]  ;;  %4338 = vst [vmem:[#allocation18_spill] sm:$0xff] %v3734_v18  ;;  %v4341_v20 = vmax.f32 %v3734_v18, 0.0 }
  0x7c   : > { %463 = vmatmul.mubr.f32.gmra.mrb[18].mxu1 %v3673_v19  ;;  %2989 = vmatprep.subr.bf16.mxu0 %v2988_v56  ;;  %4333 = vst [vmem:[#allocation13_spill] sm:$0xff] %v3698_v47  ;;  %4334 = vst [vmem:[#allocation14_spill] sm:$0xff] %v3707_v54  ;;  %v3713_v56 = vmax.f32 %v174_v48, 0.0  ;;  %v4289_v5 = vmax.f32 %v3707_v54, 0.0  ;;  %v3752_v48 = vld [vmem:[%s3484_s4 + $0x2f0] sm:$0xff] }
  0x7d   : > { %1373 = vmatmul.mubr.f32.gmra.mrb[18].mxu0 %v3678_v13  ;;  %2554 = vmatprep.mubr.msk.f32.mxu1 %vm301_vm0, %v3680_v34  ;;  %4340 = vst [vmem:[#allocation20_spill] sm:$0xff] %v3752_v48  ;;  %v150_v54 = vld [vmem:[%s3484_s4 + $0x10] sm:$0xff] }
  0x7e   : > { %2648 = vmatprep.mubr.msk.f32.mxu0 %vm301_vm0, %v3685_v7  ;;  %2831 = vmatpush1.bf16.msra.mxu1 %v2830_v26  ;;  %4335 = vst [vmem:[#allocation15_spill] sm:$0xff] %v3713_v56  ;;  %v4294_v26 = vmax.f32 %v3722_v1, 0.0  ;;  %v654_v1 = vld [vmem:[#allocation2 + $0x7a8] sm:$0xff]  ;;  %v186_v19 = vmax.f32 %v150_v54, 0.0  ;;  %v657_v54 = vld [vmem:[#allocation2 + $0x7c0] sm:$0xff] }
  0x7f   : > { %2991 = vmatpush1.bf16.msra.mxu0 %v2990_v39  ;;  %2833 = vmatprep.subr.bf16.mxu1 %v2832_v40  ;;  %v4300_v39 = vmax.f32 %v3731_v12, 0.0  ;;  %v3745_v40 = vld [vmem:[%s3484_s4 + $0xf0] sm:$0xff] }
  0x80   : > { %469 = vmatmul.mubr.f32.gmra.mrb[20].mxu1 %v3691_v41  ;;  %2993 = vmatprep.subr.bf16.mxu0 %v2992_v45  ;;  %4339 = vst [vmem:[#allocation19_spill] sm:$0xff] %v3745_v40  ;;  %v148_v45 = vld [vmem:[%s3484_s4] sm:$0xff]  ;;  %v187_v41 = vmax.f32 %v151_v36, 0.0 }
  0x81   : > { %1379 = vmatmul.mubr.f32.gmra.mrb[20].mxu0 %v3696_v38  ;;  %2555 = vmatprep.mubr.msk.f32.mxu1 %vm301_vm0, %v3698_v47  ;;  %v184_v12 = vmax.f32 %v148_v45, 0.0  ;;  %v1735_v45 = vld [vmem:[#allocation2 + $0x2a0] sm:$0xff] }
  0x82   : > { %2649 = vmatprep.mubr.msk.f32.mxu0 %vm301_vm0, %v3703_v9 }
  0x84   : > { %475 = vmatmul.mubr.f32.gmra.mrb[22].mxu1 %v3713_v56  ;;  %v1736_v56 = vld [vmem:[#allocation2 + $0x2a8] sm:$0xff] }
  0x85   : > { %1385 = vmatmul.mubr.f32.gmra.mrb[22].mxu0 %v3718_v0  ;;  %2556 = vmatprep.mubr.msk.f32.mxu1 %vm301_vm0, %v4289_v5  ;;  %v1733_v5 = vld [vmem:[#allocation2 + $0x290] sm:$0xff] }
  0x86   : > { %2650 = vmatprep.mubr.msk.f32.mxu0 %vm301_vm0, %v4290_v3  ;;  %v4315_v3 = vmax.f32 %v3752_v48, 0.0  ;;  %v2994_v47 = vpack.c.bf16 %v1733_v5, %v1731_v2  ;;  %v1737_v48 = vld [vmem:[#allocation2 + $0x2b0] sm:$0xff] }
  0x87   : > { %v2998_v36 = vpack.c.bf16 %v1737_v48, %v1735_v45  ;;  %v1743_v48 = vld [vmem:[#allocation2 + $0x2e0] sm:$0xff]  ;;  %v666_v45 = vld [vmem:[#allocation2 + $0x808] sm:$0xff] }
  0x88   : > { %481 = vmatmul.mubr.f32.gmra.mrb[24].mxu1 %v4294_v26  ;;  %v651_v26 = vld [vmem:[#allocation2 + $0x790] sm:$0xff] }
  0x89   : > { %1391 = vmatmul.mubr.f32.gmra.mrb[24].mxu0 %v4297_v27  ;;  %2557 = vmatprep.mubr.msk.f32.mxu1 %vm301_vm0, %v4300_v39  ;;  %v4342_v27 = vmax.f32 %v3745_v40, 0.0  ;;  %v656_v39 = vld [vmem:[#allocation2 + $0x7b8] sm:$0xff]  ;;  %v2834_v28 = vpack.c.bf16 %v651_v26, %v649_v10  ;;  %v653_v40 = vld [vmem:[#allocation2 + $0x7a0] sm:$0xff]  ;;  %v1741_v26 = vld [vmem:[#allocation2 + $0x2d0] sm:$0xff] }
  0x8a   : > { %2651 = vmatprep.mubr.msk.f32.mxu0 %vm301_vm0, %v4341_v20  ;;  %v1738_v20 = vld [vmem:[#allocation2 + $0x2b8] sm:$0xff]  ;;  %v2836_v34 = vpack.c.bf16 %v656_v39, %v654_v1  ;;  %v1739_v1 = vld [vmem:[#allocation2 + $0x2c0] sm:$0xff]  ;;  %v662_v39 = vld [vmem:[#allocation2 + $0x7e8] sm:$0xff] }
  0x8b   : > { %v2996_v18 = vpack.c.bf16 %v1738_v20, %v1736_v56  ;;  %v1742_v10 = vld [vmem:[#allocation2 + $0x2d8] sm:$0xff]  ;;  %v659_v56 = vld [vmem:[#allocation2 + $0x7d0] sm:$0xff]  ;;  %v4344_v20 = vmax.f32 %v3501_v63, 0.0 }
  0x8c   : > { %487 = vmatmul.mubr.f32.gmra.mrb[26].mxu1 %v4342_v27  ;;  %v655_v27 = vld [vmem:[#allocation2 + $0x7b0] sm:$0xff] }
  0x8d   : > { %1397 = vmatmul.mubr.f32.gmra.mrb[26].mxu0 %v4315_v3  ;;  %2558 = vmatprep.mubr.msk.f32.mxu1 %vm301_vm0, %v185_v35  ;;  %v658_v3 = vld [vmem:[#allocation2 + $0x7c8] sm:$0xff]  ;;  %v2838_v2 = vpack.c.bf16 %v655_v27, %v653_v40  ;;  %v1746_v40 = vld [vmem:[#allocation2 + $0x2f8] sm:$0xff]  ;;  %v1745_v27 = vld [vmem:[#allocation2 + $0x2f0] sm:$0xff] }
  0x8e   : > { %2652 = vmatprep.mubr.msk.f32.mxu0 %vm301_vm0, %v3536_v43  ;;  %v1740_v35 = vld [vmem:[#allocation2 + $0x2c8] sm:$0xff]  ;;  %v2840_v5 = vpack.c.bf16 %v660_v17, %v658_v3  ;;  %v2842_v17 = vpack.c.bf16 %v659_v56, %v657_v54  ;;  %v661_v3 = vld [vmem:[#allocation2 + $0x7e0] sm:$0xff]  ;;  %v3006_v63 = vpack.c.bf16 %v1745_v27, %v1743_v48  ;;  %v676_v27 = vld [vmem:[#allocation2 + $0x858] sm:$0xff] }
  0x8f   : > { %v665_v56 = vld [vmem:[#allocation2 + $0x800] sm:$0xff] }
  0x90   : > { %564 = vmatmul.mubr.f32.vlgmr.msra.gmra.mrb[0].mxu1 %v184_v12  ;;  %v3000_v12 = vpack.c.bf16 %v1742_v10, %v1740_v35  ;;  %v668_v35 = vld [vmem:[#allocation2 + $0x818] sm:$0xff]  ;;  %v4345_v10 = vmax.f32 %v3507_v8, 0.0 }
  0x91   : > { %1543 = vmatmul.mubr.f32.vlgmr.msra.gmra.mrb[0].mxu0 %v3552_v57  ;;  %2835 = vmatpush1.bf16.msra.mxu1 %v2834_v28  ;;  %v664_v28 = vld [vmem:[#allocation2 + $0x7f8] sm:$0xff]  ;;  %v2848_v54 = vpack.c.bf16 %v668_v35, %v666_v45  ;;  %v1756_v45 = vld [vmem:[#allocation2 + $0x348] sm:$0xff] }
  0x92   : > { %2995 = vmatpush1.bf16.msra.mxu0 %v2994_v47  ;;  %2559 = vmatprep.mubr.msk.f32.mxu1 %vm301_vm0, %v187_v41  ;;  %v4343_v41 = vmax.f32 %v3487_v32, 0.0  ;;  %v1744_v47 = vld [vmem:[#allocation2 + $0x2e8] sm:$0xff]  ;;  %v1758_v35 = vld [vmem:[#allocation2 + $0x358] sm:$0xff] }
  0x93   : > { %2653 = vmatprep.mubr.msk.f32.mxu0 %vm301_vm0, %v3559_v62  ;;  %2837 = vmatprep.subr.bf16.mxu1 %v2836_v34  ;;  %v2844_v34 = vpack.c.bf16 %v664_v28, %v662_v39  ;;  %v3004_v32 = vpack.c.bf16 %v1746_v40, %v1744_v47  ;;  %v1749_v39 = vld [vmem:[#allocation2 + $0x310] sm:$0xff]  ;;  %v670_v28 = vld [vmem:[#allocation2 + $0x828] sm:$0xff]  ;;  %v1754_v40 = vld [vmem:[#allocation2 + $0x338] sm:$0xff] }
  0x94   : > { %570 = vmatmul.mubr.f32.gmra.mrb[2].mxu1 %v186_v19  ;;  %2997 = vmatprep.subr.bf16.mxu0 %v2996_v18  ;;  %v3002_v19 = vpack.c.bf16 %v1741_v26, %v1739_v1  ;;  %v663_v18 = vld [vmem:[#allocation2 + $0x7f0] sm:$0xff]  ;;  %v4346_v26 = vmax.f32 %v3515_v15, 0.0  ;;  %v1752_v47 = vld [vmem:[#allocation2 + $0x328] sm:$0xff] }
  0x95   : > { %1549 = vmatmul.mubr.f32.gmra.mrb[2].mxu0 %v3570_v22  ;;  %2560 = vmatprep.mubr.msk.f32.mxu1 %vm301_vm0, %v4343_v41  ;;  %v667_v1 = vld [vmem:[#allocation2 + $0x810] sm:$0xff]  ;;  %v672_v41 = vld [vmem:[#allocation2 + $0x838] sm:$0xff]  ;;  %v3012_v48 = vpack.c.bf16 %v1754_v40, %v1752_v47  ;;  %v677_v40 = vld [vmem:[#allocation2 + $0x860] sm:$0xff] }
  0x96   : > { %2839 = vmatpush1.bf16.msra.mxu1 %v2838_v2  ;;  %2654 = vmatprep.mubr.msk.f32.mxu0 %vm301_vm0, %v3577_v29  ;;  %v1748_v2 = vld [vmem:[#allocation2 + $0x308] sm:$0xff] }
  0x97   : > { %2999 = vmatpush1.bf16.msra.mxu0 %v2998_v36  ;;  %2841 = vmatprep.subr.bf16.mxu1 %v2840_v5  ;;  %v1750_v36 = vld [vmem:[#allocation2 + $0x318] sm:$0xff]  ;;  %v2846_v5 = vpack.c.bf16 %v663_v18, %v661_v3  ;;  %v671_v3 = vld [vmem:[#allocation2 + $0x830] sm:$0xff]  ;;  %v1751_v18 = vld [vmem:[#allocation2 + $0x320] sm:$0xff] }
  0x98   : > { %576 = vmatmul.mubr.f32.gmra.mrb[4].mxu1 %v4344_v20  ;;  %3001 = vmatprep.subr.bf16.mxu0 %v3000_v12  ;;  %v1747_v12 = vld [vmem:[#allocation2 + $0x300] sm:$0xff]  ;;  %v3008_v8 = vpack.c.bf16 %v1750_v36, %v1748_v2  ;;  %v1753_v20 = vld [vmem:[#allocation2 + $0x330] sm:$0xff] }
  0x99   : > { %1555 = vmatmul.mubr.f32.gmra.mrb[4].mxu0 %v3588_v51  ;;  %2561 = vmatprep.mubr.msk.f32.mxu1 %vm301_vm0, %v4345_v10  ;;  %v3010_v15 = vpack.c.bf16 %v1749_v39, %v1747_v12  ;;  %v3014_v2 = vpack.c.bf16 %v1753_v20, %v1751_v18  ;;  %v678_v12 = vld [vmem:[#allocation2 + $0x868] sm:$0xff]  ;;  %v1762_v39 = vld [vmem:[#allocation2 + $0x378] sm:$0xff] }
  0x9a   : > { %2655 = vmatprep.mubr.msk.f32.mxu0 %vm301_vm0, %v3595_v59  ;;  %2843 = vmatpush1.bf16.msra.mxu1 %v2842_v17  ;;  %v2850_v17 = vpack.c.bf16 %v667_v1, %v665_v56  ;;  %v3016_v56 = vpack.c.bf16 %v1758_v35, %v1756_v45  ;;  %v1757_v1 = vld [vmem:[#allocation2 + $0x350] sm:$0xff]  ;;  %v684_v18 = vld [vmem:[#allocation2 + $0x898] sm:$0xff]  ;;  %v681_v35 = vld [vmem:[#allocation2 + $0x880] sm:$0xff] }
  0x9b   : > { %3003 = vmatpush1.bf16.msra.mxu0 %v3002_v19  ;;  %2845 = vmatprep.subr.bf16.mxu1 %v2844_v34  ;;  %v2852_v19 = vpack.c.bf16 %v672_v41, %v670_v28  ;;  %v669_v34 = vld [vmem:[#allocation2 + $0x820] sm:$0xff]  ;;  %v1766_v20 = vld [vmem:[#allocation2 + $0x398] sm:$0xff] }
  0x9c   : > { %582 = vmatmul.mubr.f32.gmra.mrb[6].mxu1 %v4346_v26  ;;  %3005 = vmatprep.subr.bf16.mxu0 %v3004_v32  ;;  %v674_v32 = vld [vmem:[#allocation2 + $0x848] sm:$0xff]  ;;  %v2854_v10 = vpack.c.bf16 %v671_v3, %v669_v34  ;;  %v680_v26 = vld [vmem:[#allocation2 + $0x878] sm:$0xff]  ;;  %v1761_v34 = vld [vmem:[#allocation2 + $0x370] sm:$0xff] }
  0x9d   : > { %1561 = vmatmul.mubr.f32.gmra.mrb[6].mxu0 %v3606_v21  ;;  %2562 = vmatprep.mubr.msk.f32.mxu1 %vm301_vm0, %v3530_v37  ;;  %v2856_v36 = vpack.c.bf16 %v676_v27, %v674_v32  ;;  %v2860_v47 = vpack.c.bf16 %v680_v26, %v678_v12  ;;  %v682_v3 = vld [vmem:[#allocation2 + $0x888] sm:$0xff] }
  0x9e   : > { %2656 = vmatprep.mubr.msk.f32.mxu0 %vm301_vm0, %v3613_v31  ;;  %2847 = vmatpush1.bf16.msra.mxu1 %v2846_v5  ;;  %v673_v5 = vld [vmem:[#allocation2 + $0x840] sm:$0xff]  ;;  %v2864_v45 = vpack.c.bf16 %v684_v18, %v682_v3 }
  0x9f   : > { %3007 = vmatpush1.bf16.msra.mxu0 %v3006_v63  ;;  %2849 = vmatprep.subr.bf16.mxu1 %v2848_v54  ;;  %v675_v63 = vld [vmem:[#allocation2 + $0x850] sm:$0xff]  ;;  %v1755_v54 = vld [vmem:[#allocation2 + $0x340] sm:$0xff] }
  0xa0   : > { %588 = vmatmul.mubr.f32.gmra.mrb[8].mxu1 %v3546_v52  ;;  %3009 = vmatprep.subr.bf16.mxu0 %v3008_v8  ;;  %v1760_v8 = vld [vmem:[#allocation2 + $0x368] sm:$0xff]  ;;  %v2858_v28 = vpack.c.bf16 %v675_v63, %v673_v5  ;;  %v3018_v41 = vpack.c.bf16 %v1757_v1, %v1755_v54  ;;  %v1765_v5 = vld [vmem:[#allocation2 + $0x390] sm:$0xff]  ;;  %v688_v54 = vld [vmem:[#allocation2 + $0x8b8] sm:$0xff] }
  0xa1   : > { %1567 = vmatmul.mubr.f32.gmra.mrb[8].mxu0 %v3624_v60  ;;  %2563 = vmatprep.mubr.msk.f32.mxu1 %vm301_vm0, %v3554_v58  ;;  %v686_v63 = vld [vmem:[#allocation2 + $0x8a8] sm:$0xff]  ;;  %v1770_v1 = vld [vmem:[#allocation2 + $0x3b8] sm:$0xff] }
  0xa2   : > { %2657 = vmatprep.mubr.msk.f32.mxu0 %vm301_vm0, %v3631_v4  ;;  %2851 = vmatpush1.bf16.msra.mxu1 %v2850_v17  ;;  %v679_v17 = vld [vmem:[#allocation2 + $0x870] sm:$0xff] }
  0xa3   : > { %3011 = vmatpush1.bf16.msra.mxu0 %v3010_v15  ;;  %2853 = vmatprep.subr.bf16.mxu1 %v2852_v19  ;;  %v1759_v15 = vld [vmem:[#allocation2 + $0x360] sm:$0xff]  ;;  %v3020_v19 = vpack.c.bf16 %v1762_v39, %v1760_v8  ;;  %v2862_v32 = vpack.c.bf16 %v679_v17, %v677_v40  ;;  %v2868_v8 = vpack.c.bf16 %v688_v54, %v686_v63  ;;  %v1769_v40 = vld [vmem:[#allocation2 + $0x3b0] sm:$0xff]  ;;  %v949_v17 = vld [vmem:[#allocation2 + $0x148] sm:$0xff] }
  0xa4   : > { %594 = vmatmul.mubr.f32.gmra.mrb[10].mxu1 %v3565_v14  ;;  %3013 = vmatprep.subr.bf16.mxu0 %v3012_v48  ;;  %v1764_v48 = vld [vmem:[#allocation2 + $0x388] sm:$0xff]  ;;  %v3022_v27 = vpack.c.bf16 %v1761_v34, %v1759_v15  ;;  %v685_v39 = vld [vmem:[#allocation2 + $0x8a0] sm:$0xff]  ;;  %v951_v15 = vld [vmem:[#allocation2 + $0x158] sm:$0xff] }
  0xa5   : > { %1573 = vmatmul.mubr.f32.gmra.mrb[10].mxu0 %v3642_v42  ;;  %2564 = vmatprep.mubr.msk.f32.mxu1 %vm301_vm0, %v3572_v24  ;;  %v1994_v34 = vld [vmem:[#allocation2 + $0x658] sm:$0xff]  ;;  %v4352_v63 = vld [vmem:[#allocation10_spill] sm:$0xff] }
  0xa6   : > { %2658 = vmatprep.mubr.msk.f32.mxu0 %vm301_vm0, %v3649_v50  ;;  %2855 = vmatpush1.bf16.msra.mxu1 %v2854_v10  ;;  %v683_v10 = vld [vmem:[#allocation2 + $0x890] sm:$0xff]  ;;  %v4353_v54 = vld [vmem:[#allocation20_spill] sm:$0xff] }
  0xa7   : > { %3015 = vmatpush1.bf16.msra.mxu0 %v3014_v2  ;;  %2857 = vmatprep.subr.bf16.mxu1 %v2856_v36  ;;  %v1763_v2 = vld [vmem:[#allocation2 + $0x380] sm:$0xff]  ;;  %v3024_v36 = vpack.c.bf16 %v1766_v20, %v1764_v48  ;;  %v2866_v12 = vpack.c.bf16 %v683_v10, %v681_v35  ;;  %v2872_v48 = vpack.c.bf16 %v951_v15, %v949_v17  ;;  %v4350_v10 = vld [vmem:[#allocation18_spill] sm:$0xff]  ;;  %v950_v15 = vld [vmem:[#allocation2 + $0x150] sm:$0xff] }
  0xa8   : > { %600 = vmatmul.mubr.f32.gmra.mrb[12].mxu1 %v3583_v46  ;;  %3017 = vmatprep.subr.bf16.mxu0 %v3016_v56  ;;  %v1768_v56 = vld [vmem:[#allocation2 + $0x3a8] sm:$0xff]  ;;  %v3026_v26 = vpack.c.bf16 %v1765_v5, %v1763_v2  ;;  %v4349_v35 = vld [vmem:[#allocation9_spill] sm:$0xff]  ;;  %v4351_v2 = vmax.f32 %v4350_v10, 0.0  ;;  %v2623_v5 = vld [vmem:[%s3484_s4 + $0x318] sm:$0xff] }
  0xa9   : > { %1579 = vmatmul.mubr.f32.gmra.mrb[12].mxu0 %v3660_v16  ;;  %2565 = vmatprep.mubr.msk.f32.mxu1 %vm301_vm0, %v3590_v53  ;;  %v948_v17 = vld [vmem:[#allocation2 + $0x140] sm:$0xff]  ;;  %v1998_v10 = vld [vmem:[#allocation2 + $0x678] sm:$0xff] }
  0xaa   : > { %2659 = vmatprep.mubr.msk.f32.mxu0 %vm301_vm0, %v3667_v33  ;;  %2859 = vmatpush1.bf16.msra.mxu1 %v2858_v28  ;;  %v687_v28 = vld [vmem:[#allocation2 + $0x8b0] sm:$0xff] }
  0xab   : > { %3019 = vmatpush1.bf16.msra.mxu0 %v3018_v41  ;;  %2861 = vmatprep.subr.bf16.mxu1 %v2860_v47  ;;  %v1767_v41 = vld [vmem:[#allocation2 + $0x3a0] sm:$0xff]  ;;  %v3028_v47 = vpack.c.bf16 %v1770_v1, %v1768_v56  ;;  %v2870_v3 = vpack.c.bf16 %v687_v28, %v685_v39  ;;  %v4354_v56 = vmax.f32 %v4353_v54, 0.0  ;;  %v4355_v1 = vld [vmem:[#allocation11_spill] sm:$0xff]  ;;  %v4356_v39 = vld [vmem:[#allocation12_spill] sm:$0xff] }
  0xac   : > { %606 = vmatmul.mubr.f32.gmra.mrb[14].mxu1 %v3601_v11  ;;  %3021 = vmatprep.subr.bf16.mxu0 %v3020_v19  ;;  %v1992_v19 = vld [vmem:[#allocation2 + $0x648] sm:$0xff]  ;;  %v3030_v18 = vpack.c.bf16 %v1769_v40, %v1767_v41  ;;  %v4357_v28 = vld [vmem:[#allocation13_spill] sm:$0xff] }
  0xad   : > { %1585 = vmatmul.mubr.f32.gmra.mrb[14].mxu0 %v3678_v13  ;;  %2566 = vmatprep.mubr.msk.f32.mxu1 %vm301_vm0, %v3608_v25  ;;  %v3032_v20 = vpack.c.bf16 %v1994_v34, %v1992_v19  ;;  %v2668_v40 = vld [vmem:[%s3484_s4 + $0x400] sm:$0xff]  ;;  %v1993_v34 = vld [vmem:[#allocation2 + $0x650] sm:$0xff] }
  0xae   : > { %2660 = vmatprep.mubr.msk.f32.mxu0 %vm301_vm0, %v3685_v7  ;;  %2863 = vmatpush1.bf16.msra.mxu1 %v2862_v32  ;;  %v4347_v32 = vmax.f32 %v3710_v55, 0.0  ;;  %v1991_v19 = vld [vmem:[#allocation2 + $0x640] sm:$0xff] }
  0xaf   : > { %3023 = vmatpush1.bf16.msra.mxu0 %v3022_v27  ;;  %2865 = vmatprep.subr.bf16.mxu1 %v2864_v45  ;;  %v2621_v27 = vld [vmem:[%s3484_s4 + $0x308] sm:$0xff]  ;;  %v4348_v45 = vmax.f32 %v3728_v6, 0.0 }
  0xb0   : > { %612 = vmatmul.mubr.f32.gmra.mrb[16].mxu1 %v3619_v49  ;;  %3025 = vmatprep.subr.bf16.mxu0 %v3024_v36  ;;  %v944_v55 = vmax.f32 %v2621_v27, 0.0  ;;  %v2620_v36 = vld [vmem:[%s3484_s4 + $0x300] sm:$0xff]  ;;  %v2874_v27 = vpack.c.bf16 %v950_v15, %v948_v17  ;;  %v2002_v17 = vld [vmem:[#allocation2 + $0x698] sm:$0xff] }
  0xb1   : > { %1591 = vmatmul.mubr.f32.gmra.mrb[16].mxu0 %v3696_v38  ;;  %2567 = vmatprep.mubr.msk.f32.mxu1 %vm301_vm0, %v3626_v61  ;;  %v943_v6 = vmax.f32 %v2620_v36, 0.0  ;;  %v952_v36 = vld [vmem:[#allocation2 + $0x160] sm:$0xff] }
  0xb2   : > { %2661 = vmatprep.mubr.msk.f32.mxu0 %vm301_vm0, %v3703_v9  ;;  %2867 = vmatpush1.bf16.msra.mxu1 %v2866_v12  ;;  %v946_v12 = vmax.f32 %v2623_v5, 0.0 }
  0xb3   : > { %3027 = vmatpush1.bf16.msra.mxu0 %v3026_v26  ;;  %2869 = vmatprep.subr.bf16.mxu1 %v2868_v8  ;;  %v2622_v26 = vld [vmem:[%s3484_s4 + $0x310] sm:$0xff]  ;;  %v2669_v8 = vld [vmem:[%s3484_s4 + $0x408] sm:$0xff] }
  0xb4   : > { %618 = vmatmul.mubr.f32.gmra.mrb[18].mxu1 %v3637_v30  ;;  %3029 = vmatprep.subr.bf16.mxu0 %v3028_v47  ;;  %v945_v41 = vmax.f32 %v2622_v26, 0.0  ;;  %v1695_v47 = vmax.f32 %v2669_v8, 0.0  ;;  %v1997_v26 = vld [vmem:[#allocation2 + $0x670] sm:$0xff]  ;;  %v957_v8 = vld [vmem:[#allocation2 + $0x188] sm:$0xff] }
  0xb5   : > { %1597 = vmatmul.mubr.f32.gmra.mrb[18].mxu0 %v3718_v0  ;;  %2568 = vmatprep.mubr.msk.f32.mxu1 %vm301_vm0, %v3644_v44 }
  0xb6   : > { %2662 = vmatprep.mubr.msk.f32.mxu0 %vm301_vm0, %v4347_v32  ;;  %2871 = vmatpush1.bf16.msra.mxu1 %v2870_v3  ;;  %v4358_v3 = vld [vmem:[#allocation15_spill] sm:$0xff]  ;;  %v1694_v32 = vmax.f32 %v2668_v40, 0.0  ;;  %v2000_v40 = vld [vmem:[#allocation2 + $0x688] sm:$0xff] }
  0xb7   : > { %3031 = vmatpush1.bf16.msra.mxu0 %v3030_v18  ;;  %2873 = vmatprep.subr.bf16.mxu1 %v2872_v48  ;;  %v2671_v18 = vld [vmem:[%s3484_s4 + $0x418] sm:$0xff]  ;;  %v953_v48 = vld [vmem:[#allocation2 + $0x168] sm:$0xff] }
  0xb8   : > { %624 = vmatmul.mubr.f32.gmra.mrb[20].mxu1 %v3655_v23  ;;  %3033 = vmatprep.subr.bf16.mxu0 %v3032_v20  ;;  %v955_v20 = vld [vmem:[#allocation2 + $0x178] sm:$0xff]  ;;  %v1697_v5 = vmax.f32 %v2671_v18, 0.0 }
  0xb9   : > { %1603 = vmatmul.mubr.f32.gmra.mrb[20].mxu0 %v4348_v45  ;;  %2569 = vmatprep.mubr.msk.f32.mxu1 %vm301_vm0, %v4349_v35  ;;  %v1996_v45 = vld [vmem:[#allocation2 + $0x668] sm:$0xff]  ;;  %v2876_v54 = vpack.c.bf16 %v955_v20, %v953_v48  ;;  %v3880_v18 = vld [vmem:[%s3484_s4 + $0x438] sm:$0xff]  ;;  %v956_v20 = vld [vmem:[#allocation2 + $0x180] sm:$0xff] }
  0xba   : > { %2663 = vmatprep.mubr.msk.f32.mxu0 %vm301_vm0, %v4351_v2  ;;  %v3034_v2 = vpack.c.bf16 %v1993_v34, %v1991_v19  ;;  %v3877_v34 = vld [vmem:[%s3484_s4 + $0x420] sm:$0xff] }
  0xbc   : > { %630 = vmatmul.mubr.f32.gmra.mrb[22].mxu1 %v4352_v63 }
  0xbd   : > { %1609 = vmatmul.mubr.f32.gmra.mrb[22].mxu0 %v4354_v56  ;;  %2570 = vmatprep.mubr.msk.f32.mxu1 %vm301_vm0, %v4355_v1  ;;  %v954_v56 = vld [vmem:[#allocation2 + $0x170] sm:$0xff] }
  0xbe   : > { %2664 = vmatprep.mubr.msk.f32.mxu0 %vm301_vm0, %v944_v55  ;;  %v2670_v55 = vld [vmem:[%s3484_s4 + $0x410] sm:$0xff]  ;;  %v2878_v15 = vpack.c.bf16 %v954_v56, %v952_v36  ;;  %v2004_v36 = vld [vmem:[#allocation2 + $0x6a8] sm:$0xff] }
  0xc0   : > { %636 = vmatmul.mubr.f32.gmra.mrb[24].mxu1 %v4356_v39 }
  0xc1   : > { %1615 = vmatmul.mubr.f32.gmra.mrb[24].mxu0 %v943_v6  ;;  %2571 = vmatprep.mubr.msk.f32.mxu1 %vm301_vm0, %v4357_v28  ;;  %v3870_v6 = vld [vmem:[%s3484_s4 + $0x428] sm:$0xff] }
  0xc2   : > { %2665 = vmatprep.mubr.msk.f32.mxu0 %vm301_vm0, %v946_v12  ;;  %v1995_v12 = vld [vmem:[#allocation2 + $0x660] sm:$0xff]  ;;  %v1699_v19 = vmax.f32 %v3870_v6, 0.0  ;;  %v4367_v6 = vmax.f32 %v3880_v18, 0.0 }
  0xc4   : > { %642 = vmatmul.mubr.f32.gmra.mrb[26].mxu1 %v4358_v3 }
  0xc5   : > { %1621 = vmatmul.mubr.f32.gmra.mrb[26].mxu0 %v945_v41  ;;  %2572 = vmatprep.mubr.msk.f32.mxu1 %vm301_vm0, %v3530_v37  ;;  %v3036_v37 = vpack.c.bf16 %v1998_v10, %v1996_v45  ;;  %v959_v41 = vld [vmem:[#allocation2 + $0x198] sm:$0xff]  ;;  %v2001_v45 = vld [vmem:[#allocation2 + $0x690] sm:$0xff]  ;;  %v961_v10 = vld [vmem:[#allocation2 + $0x1a8] sm:$0xff] }
  0xc6   : > { %2704 = vmatprep.mubr.msk.f32.mxu0 %vm301_vm0, %v1695_v47  ;;  %v1696_v47 = vmax.f32 %v2670_v55, 0.0  ;;  %v2880_v48 = vpack.c.bf16 %v959_v41, %v957_v8  ;;  %v1698_v55 = vmax.f32 %v3877_v34, 0.0  ;;  %v962_v8 = vld [vmem:[#allocation2 + $0x1b0] sm:$0xff]  ;;  %v2003_v41 = vld [vmem:[#allocation2 + $0x6a0] sm:$0xff] }
  0xc8   : > { %760 = vmatmul.mubr.f32.vlgmr.msra.gmra.mrb[0].mxu1 %v3546_v52  ;;  %v3038_v52 = vpack.c.bf16 %v1997_v26, %v1995_v12  ;;  %v2677_v12 = vld [vmem:[%s3484_s4 + $0x448] sm:$0xff] }
  0xc9   : > { %1878 = vmatmul.mubr.f32.vlgmr.msra.gmra.mrb[0].mxu0 %v1694_v32  ;;  %2875 = vmatpush1.bf16.msra.mxu1 %v2874_v27  ;;  %v958_v32 = vld [vmem:[#allocation2 + $0x190] sm:$0xff]  ;;  %v1999_v27 = vld [vmem:[#allocation2 + $0x680] sm:$0xff] }
  0xca   : > { %3035 = vmatpush1.bf16.msra.mxu0 %v3034_v2  ;;  %2573 = vmatprep.mubr.msk.f32.mxu1 %vm301_vm0, %v3554_v58  ;;  %v3040_v58 = vpack.c.bf16 %v2002_v17, %v2000_v40  ;;  %v963_v2 = vld [vmem:[#allocation2 + $0x1b8] sm:$0xff]  ;;  %v2882_v56 = vpack.c.bf16 %v958_v32, %v956_v20  ;;  %v2005_v40 = vld [vmem:[#allocation2 + $0x6b0] sm:$0xff]  ;;  %v965_v17 = vld [vmem:[#allocation2 + $0x1c8] sm:$0xff] }
  0xcb   : > { %2705 = vmatprep.mubr.msk.f32.mxu0 %vm301_vm0, %v1697_v5  ;;  %2877 = vmatprep.subr.bf16.mxu1 %v2876_v54  ;;  %v2006_v5 = vld [vmem:[#allocation2 + $0x6b8] sm:$0xff]  ;;  %v3892_v54 = vld [vmem:[%s3484_s4 + $0x430] sm:$0xff]  ;;  %v2884_v26 = vpack.c.bf16 %v963_v2, %v961_v10  ;;  %v2676_v32 = vld [vmem:[%s3484_s4 + $0x440] sm:$0xff] }
  0xcc   : > { %766 = vmatmul.mubr.f32.gmra.mrb[2].mxu1 %v3565_v14  ;;  %3037 = vmatprep.subr.bf16.mxu0 %v3036_v37  ;;  %v4318_v14 = vmax.f32 %v3880_v18, 0.0  ;;  %v3042_v37 = vpack.c.bf16 %v2001_v45, %v1999_v27  ;;  %v2010_v20 = vld [vmem:[#allocation2 + $0x6d8] sm:$0xff]  ;;  %v3046_v45 = vpack.c.bf16 %v2005_v40, %v2003_v41  ;;  %v964_v2 = vld [vmem:[#allocation2 + $0x1c0] sm:$0xff]  ;;  %v2681_v41 = vld [vmem:[%s3484_s4 + $0x468] sm:$0xff]  ;;  %v4368_v34 = vmax.f32 %v3892_v54, 0.0 }
  0xcd   : > { %1884 = vmatmul.mubr.f32.gmra.mrb[2].mxu0 %v1696_v47  ;;  %2574 = vmatprep.mubr.msk.f32.mxu1 %vm301_vm0, %v3572_v24  ;;  %v960_v24 = vld [vmem:[#allocation2 + $0x1a0] sm:$0xff]  ;;  %v3044_v47 = vpack.c.bf16 %v2006_v5, %v2004_v36 }
  0xce   : > { %2879 = vmatpush1.bf16.msra.mxu1 %v2878_v15  ;;  %2706 = vmatprep.mubr.msk.f32.mxu0 %vm301_vm0, %v1699_v19  ;;  %v967_v15 = vld [vmem:[#allocation2 + $0x1d8] sm:$0xff]  ;;  %v2886_v27 = vpack.c.bf16 %v962_v8, %v960_v24  ;;  %v2007_v36 = vld [vmem:[#allocation2 + $0x6c0] sm:$0xff]  ;;  %v2678_v8 = vld [vmem:[%s3484_s4 + $0x450] sm:$0xff] }
  0xcf   : > { %3039 = vmatpush1.bf16.msra.mxu0 %v3038_v52  ;;  %2881 = vmatprep.subr.bf16.mxu1 %v2880_v48  ;;  %v4319_v52 = vmax.f32 %v3892_v54, 0.0  ;;  %v2008_v48 = vld [vmem:[#allocation2 + $0x6c8] sm:$0xff]  ;;  %v2888_v10 = vpack.c.bf16 %v967_v15, %v965_v17  ;;  %v2014_v24 = vld [vmem:[#allocation2 + $0x6f8] sm:$0xff]  ;;  %v968_v15 = vld [vmem:[#allocation2 + $0x1e0] sm:$0xff] }
  0xd0   : > { %772 = vmatmul.mubr.f32.gmra.mrb[4].mxu1 %v3583_v46  ;;  %3041 = vmatprep.subr.bf16.mxu0 %v3040_v58  ;;  %v3904_v46 = vmax.f32 %v2677_v12, 0.0  ;;  %v2679_v58 = vld [vmem:[%s3484_s4 + $0x458] sm:$0xff]  ;;  %v3048_v5 = vpack.c.bf16 %v2010_v20, %v2008_v48  ;;  %v970_v48 = vld [vmem:[#allocation2 + $0x1f0] sm:$0xff]  ;;  %v2232_v54 = vld [vmem:[#allocation2 + $0xa88] sm:$0xff] }
  0xd1   : > { %1890 = vmatmul.mubr.f32.gmra.mrb[4].mxu0 %v1698_v55  ;;  %2575 = vmatprep.mubr.msk.f32.mxu1 %vm301_vm0, %v3590_v53  ;;  %v966_v53 = vld [vmem:[#allocation2 + $0x1d0] sm:$0xff]  ;;  %v971_v12 = vld [vmem:[#allocation2 + $0x1f8] sm:$0xff] }
  0xd2   : > { %2707 = vmatprep.mubr.msk.f32.mxu0 %vm301_vm0, %v4318_v14  ;;  %2883 = vmatpush1.bf16.msra.mxu1 %v2882_v56  ;;  %v2009_v14 = vld [vmem:[#allocation2 + $0x6d0] sm:$0xff]  ;;  %v969_v56 = vld [vmem:[#allocation2 + $0x1e8] sm:$0xff] }
  0xd3   : > { %3043 = vmatpush1.bf16.msra.mxu0 %v3042_v37  ;;  %2885 = vmatprep.subr.bf16.mxu1 %v2884_v26  ;;  %v3913_v37 = vmax.f32 %v2676_v32, 0.0  ;;  %v2012_v26 = vld [vmem:[#allocation2 + $0x6e8] sm:$0xff]  ;;  %v3050_v40 = vpack.c.bf16 %v2009_v14, %v2007_v36  ;;  %v2892_v17 = vpack.c.bf16 %v971_v12, %v969_v56  ;;  %v2013_v32 = vld [vmem:[#allocation2 + $0x6f0] sm:$0xff]  ;;  %v2894_v36 = vpack.c.bf16 %v970_v48, %v968_v15  ;;  %v972_v12 = vld [vmem:[#allocation2 + $0x200] sm:$0xff] }
  0xd4   : > { %778 = vmatmul.mubr.f32.gmra.mrb[6].mxu1 %v3601_v11  ;;  %3045 = vmatprep.subr.bf16.mxu0 %v3044_v47  ;;  %v3917_v11 = vmax.f32 %v2679_v58, 0.0  ;;  %v2890_v47 = vpack.c.bf16 %v966_v53, %v964_v2  ;;  %v3052_v20 = vpack.c.bf16 %v2014_v24, %v2012_v26  ;;  %v975_v58 = vld [vmem:[#allocation2 + $0x218] sm:$0xff]  ;;  %v2016_v14 = vld [vmem:[#allocation2 + $0x708] sm:$0xff]  ;;  %v3929_v2 = vmax.f32 %v2681_v41, 0.0  ;;  %v2015_v26 = vld [vmem:[#allocation2 + $0x700] sm:$0xff] }
  0xd5   : > { %1896 = vmatmul.mubr.f32.gmra.mrb[6].mxu0 %v4319_v52  ;;  %2576 = vmatprep.mubr.msk.f32.mxu1 %vm301_vm0, %v3608_v25  ;;  %v2011_v25 = vld [vmem:[#allocation2 + $0x6e0] sm:$0xff]  ;;  %v2683_v53 = vld [vmem:[%s3484_s4 + $0x478] sm:$0xff]  ;;  %v977_v41 = vld [vmem:[#allocation2 + $0x228] sm:$0xff] }
  0xd6   : > { %2708 = vmatprep.mubr.msk.f32.mxu0 %vm301_vm0, %v3904_v46  ;;  %2887 = vmatpush1.bf16.msra.mxu1 %v2886_v27  ;;  %v973_v27 = vld [vmem:[#allocation2 + $0x208] sm:$0xff]  ;;  %v979_v52 = vld [vmem:[#allocation2 + $0x238] sm:$0xff]  ;;  %v3941_v15 = vmax.f32 %v2683_v53, 0.0 }
  0xd7   : > { %3047 = vmatpush1.bf16.msra.mxu0 %v3046_v45  ;;  %2889 = vmatprep.subr.bf16.mxu1 %v2888_v10  ;;  %v3925_v45 = vmax.f32 %v2678_v8, 0.0  ;;  %v2018_v10 = vld [vmem:[#allocation2 + $0x718] sm:$0xff]  ;;  %v2896_v56 = vpack.c.bf16 %v975_v58, %v973_v27  ;;  %v2017_v8 = vld [vmem:[#allocation2 + $0x710] sm:$0xff]  ;;  %v2685_v48 = vld [vmem:[%s3484_s4 + $0x488] sm:$0xff] }
  0xd8   : > { %784 = vmatmul.mubr.f32.gmra.mrb[8].mxu1 %v3619_v49  ;;  %3049 = vmatprep.subr.bf16.mxu0 %v3048_v5  ;;  %v2680_v49 = vld [vmem:[%s3484_s4 + $0x460] sm:$0xff]  ;;  %v3054_v5 = vpack.c.bf16 %v2013_v32, %v2011_v25  ;;  %v3056_v24 = vpack.c.bf16 %v2018_v10, %v2016_v14  ;;  %v2900_v32 = vpack.c.bf16 %v979_v52, %v977_v41  ;;  %v2021_v10 = vld [vmem:[#allocation2 + $0x730] sm:$0xff]  ;;  %v983_v53 = vld [vmem:[#allocation2 + $0x258] sm:$0xff] }
  0xd9   : > { %1902 = vmatmul.mubr.f32.gmra.mrb[8].mxu0 %v3913_v37  ;;  %2577 = vmatprep.mubr.msk.f32.mxu1 %vm301_vm0, %v3626_v61  ;;  %v974_v61 = vld [vmem:[#allocation2 + $0x210] sm:$0xff]  ;;  %v976_v27 = vld [vmem:[#allocation2 + $0x220] sm:$0xff]  ;;  %v2024_v52 = vld [vmem:[#allocation2 + $0x748] sm:$0xff] }
  0xda   : > { %2709 = vmatprep.mubr.msk.f32.mxu0 %vm301_vm0, %v3917_v11  ;;  %2891 = vmatpush1.bf16.msra.mxu1 %v2890_v47  ;;  %v3937_v47 = vmax.f32 %v2680_v49, 0.0  ;;  %v2898_v25 = vpack.c.bf16 %v974_v61, %v972_v12  ;;  %v2019_v58 = vld [vmem:[#allocation2 + $0x720] sm:$0xff]  ;;  %v981_v49 = vld [vmem:[#allocation2 + $0x248] sm:$0xff]  ;;  %v2687_v12 = vld [vmem:[%s3484_s4 + $0x498] sm:$0xff] }
  0xdb   : > { %3051 = vmatpush1.bf16.msra.mxu0 %v3050_v40  ;;  %2893 = vmatprep.subr.bf16.mxu1 %v2892_v17  ;;  %v2020_v40 = vld [vmem:[#allocation2 + $0x728] sm:$0xff]  ;;  %v2022_v17 = vld [vmem:[#allocation2 + $0x738] sm:$0xff]  ;;  %v2023_v41 = vld [vmem:[#allocation2 + $0x740] sm:$0xff] }
  0xdc   : > { %790 = vmatmul.mubr.f32.gmra.mrb[10].mxu1 %v3637_v30  ;;  %3053 = vmatprep.subr.bf16.mxu0 %v3052_v20  ;;  %v2682_v30 = vld [vmem:[%s3484_s4 + $0x470] sm:$0xff]  ;;  %v3058_v20 = vpack.c.bf16 %v2017_v8, %v2015_v26  ;;  %v3060_v14 = vpack.c.bf16 %v2022_v17, %v2020_v40  ;;  %v3062_v26 = vpack.c.bf16 %v2021_v10, %v2019_v58  ;;  %v980_v8 = vld [vmem:[#allocation2 + $0x240] sm:$0xff] }
  0xdd   : > { %1908 = vmatmul.mubr.f32.gmra.mrb[10].mxu0 %v3925_v45  ;;  %2578 = vmatprep.mubr.msk.f32.mxu1 %vm301_vm0, %v3644_v44  ;;  %v978_v44 = vld [vmem:[#allocation2 + $0x230] sm:$0xff] }
  0xde   : > { %2710 = vmatprep.mubr.msk.f32.mxu0 %vm301_vm0, %v3929_v2  ;;  %2895 = vmatpush1.bf16.msra.mxu1 %v2894_v36  ;;  %v3949_v36 = vmax.f32 %v2682_v30, 0.0  ;;  %v2902_v61 = vpack.c.bf16 %v978_v44, %v976_v27  ;;  %v2025_v17 = vld [vmem:[#allocation2 + $0x750] sm:$0xff]  ;;  %v985_v30 = vld [vmem:[#allocation2 + $0x268] sm:$0xff]  ;;  %v3965_v27 = vmax.f32 %v2687_v12, 0.0  ;;  %v2218_v12 = vld [vmem:[#allocation2 + $0xa18] sm:$0xff] }
  0xdf   : > { %3055 = vmatpush1.bf16.msra.mxu0 %v3054_v5  ;;  %2897 = vmatprep.subr.bf16.mxu1 %v2896_v56  ;;  %v2026_v5 = vld [vmem:[#allocation2 + $0x758] sm:$0xff]  ;;  %v3953_v56 = vmax.f32 %v2685_v48, 0.0  ;;  %v2689_v44 = vld [vmem:[%s3484_s4 + $0x4a8] sm:$0xff] }
  0xe0   : > { %796 = vmatmul.mubr.f32.gmra.mrb[12].mxu1 %v3655_v23  ;;  %3057 = vmatprep.subr.bf16.mxu0 %v3056_v24  ;;  %v2684_v23 = vld [vmem:[%s3484_s4 + $0x480] sm:$0xff]  ;;  %v2904_v24 = vpack.c.bf16 %v983_v53, %v981_v49  ;;  %v3064_v40 = vpack.c.bf16 %v2026_v5, %v2024_v52  ;;  %v987_v48 = vld [vmem:[#allocation2 + $0x278] sm:$0xff]  ;;  %v2029_v5 = vld [vmem:[#allocation2 + $0x770] sm:$0xff] }
  0xe1   : > { %1914 = vmatmul.mubr.f32.gmra.mrb[12].mxu0 %v3937_v47  ;;  %2579 = vmatprep.mubr.msk.f32.mxu1 %vm301_vm0, %v4349_v35  ;;  %v982_v35 = vld [vmem:[#allocation2 + $0x250] sm:$0xff]  ;;  %v2908_v10 = vpack.c.bf16 %v987_v48, %v985_v30  ;;  %v984_v49 = vld [vmem:[#allocation2 + $0x260] sm:$0xff] }
  0xe2   : > { %2711 = vmatprep.mubr.msk.f32.mxu0 %vm301_vm0, %v3941_v15  ;;  %2899 = vmatpush1.bf16.msra.mxu1 %v2898_v25  ;;  %v3961_v25 = vmax.f32 %v2684_v23, 0.0  ;;  %v2906_v58 = vpack.c.bf16 %v982_v35, %v980_v8  ;;  %v2027_v53 = vld [vmem:[#allocation2 + $0x760] sm:$0xff]  ;;  %v2216_v23 = vld [vmem:[#allocation2 + $0xa08] sm:$0xff]  ;;  %v2691_v8 = vld [vmem:[%s3484_s4 + $0x4b8] sm:$0xff] }
  0xe3   : > { %3059 = vmatpush1.bf16.msra.mxu0 %v3058_v20  ;;  %2901 = vmatprep.subr.bf16.mxu1 %v2900_v32  ;;  %v2028_v20 = vld [vmem:[#allocation2 + $0x768] sm:$0xff]  ;;  %v2030_v32 = vld [vmem:[#allocation2 + $0x778] sm:$0xff]  ;;  %v3070_v35 = vpack.c.bf16 %v2029_v5, %v2027_v53  ;;  %v3990_v30 = vmax.f32 %v2691_v8, 0.0  ;;  %v2690_v48 = vld [vmem:[%s3484_s4 + $0x4b0] sm:$0xff] }
  0xe4   : > { %802 = vmatmul.mubr.f32.gmra.mrb[14].mxu1 %v4352_v63  ;;  %3061 = vmatprep.subr.bf16.mxu0 %v3060_v14  ;;  %v2686_v63 = vld [vmem:[%s3484_s4 + $0x490] sm:$0xff]  ;;  %v3066_v14 = vpack.c.bf16 %v2025_v17, %v2023_v41  ;;  %v3068_v52 = vpack.c.bf16 %v2030_v32, %v2028_v20  ;;  %v3072_v41 = vpack.c.bf16 %v2218_v12, %v2216_v23  ;;  %v181_v20 = vld [vmem:[%s3484_s4 + $0x108] sm:$0xff]  ;;  %v4361_v32 = vld [vmem:[#allocation16_spill] sm:$0xff] }
  0xe5   : > { %1920 = vmatmul.mubr.f32.gmra.mrb[14].mxu0 %v3949_v36  ;;  %2580 = vmatprep.mubr.msk.f32.mxu1 %vm301_vm0, %v4355_v1  ;;  %v986_v1 = vld [vmem:[#allocation2 + $0x270] sm:$0xff]  ;;  %v2692_v53 = vld [vmem:[%s3484_s4 + $0x4c0] sm:$0xff]  ;;  %v2695_v5 = vld [vmem:[%s3484_s4 + $0x4d8] sm:$0xff] }
  0xe6   : > { %2712 = vmatprep.mubr.msk.f32.mxu0 %vm301_vm0, %v3953_v56  ;;  %2903 = vmatpush1.bf16.msra.mxu1 %v2902_v61  ;;  %v3973_v61 = vmax.f32 %v2686_v63, 0.0  ;;  %v4362_v63 = vmax.f32 %v4361_v32, 0.0  ;;  %v4365_v23 = vld [vmem:[#allocation19_spill] sm:$0xff]  ;;  %v2588_v32 = vld [vmem:[%s3484_s4 + $0x200] sm:$0xff] }
  0xe7   : > { %3063 = vmatpush1.bf16.msra.mxu0 %v3062_v26  ;;  %2905 = vmatprep.subr.bf16.mxu1 %v2904_v24  ;;  %v3977_v26 = vmax.f32 %v2689_v44, 0.0  ;;  %v2688_v24 = vld [vmem:[%s3484_s4 + $0x4a0] sm:$0xff]  ;;  %v4366_v12 = vmax.f32 %v4365_v23, 0.0 }
  0xe8   : > { %808 = vmatmul.mubr.f32.gmra.mrb[16].mxu1 %v4356_v39  ;;  %3065 = vmatprep.subr.bf16.mxu0 %v3064_v40  ;;  %v2910_v39 = vpack.c.bf16 %v986_v1, %v984_v49  ;;  %v3986_v17 = vmax.f32 %v2688_v24, 0.0  ;;  %v4363_v44 = vld [vmem:[#allocation17_spill] sm:$0xff] }
  0xe9   : > { %1926 = vmatmul.mubr.f32.gmra.mrb[16].mxu0 %v3961_v25  ;;  %2581 = vmatprep.mubr.msk.f32.mxu1 %vm301_vm0, %v4357_v28  ;;  %v4359_v28 = vld [vmem:[#allocation14_spill] sm:$0xff]  ;;  %v180_v49 = vld [vmem:[%s3484_s4 + $0x100] sm:$0xff] }
  0xea   : > { %2713 = vmatprep.mubr.msk.f32.mxu0 %vm301_vm0, %v3965_v27  ;;  %2907 = vmatpush1.bf16.msra.mxu1 %v2906_v58  ;;  %v4360_v40 = vmax.f32 %v4359_v28, 0.0  ;;  %v4364_v58 = vmax.f32 %v4363_v44, 0.0  ;;  %v216_v24 = vmax.f32 %v180_v49, 0.0  ;;  %v2694_v28 = vld [vmem:[%s3484_s4 + $0x4d0] sm:$0xff]  ;;  %v2220_v49 = vld [vmem:[#allocation2 + $0xa28] sm:$0xff] }
  0xeb   : > { %3067 = vmatpush1.bf16.msra.mxu0 %v3066_v14  ;;  %2909 = vmatprep.subr.bf16.mxu1 %v2908_v10  ;;  %v4001_v14 = vmax.f32 %v2690_v48, 0.0  ;;  %v217_v10 = vmax.f32 %v181_v20, 0.0  ;;  %v4026_v20 = vmax.f32 %v2694_v28, 0.0  ;;  %v2217_v44 = vld [vmem:[#allocation2 + $0xa10] sm:$0xff]  ;;  %v2224_v28 = vld [vmem:[#allocation2 + $0xa48] sm:$0xff] }
  0xec   : > { %814 = vmatmul.mubr.f32.gmra.mrb[18].mxu1 %v4358_v3  ;;  %3069 = vmatprep.subr.bf16.mxu0 %v3068_v52  ;;  %v2693_v3 = vld [vmem:[%s3484_s4 + $0x4c8] sm:$0xff]  ;;  %v183_v52 = vld [vmem:[%s3484_s4 + $0x118] sm:$0xff] }
  0xed   : > { %1932 = vmatmul.mubr.f32.gmra.mrb[18].mxu0 %v3973_v61  ;;  %2582 = vmatprep.mubr.msk.f32.mxu1 %vm301_vm0, %v4360_v40  ;;  %v4006_v1 = vmax.f32 %v2693_v3, 0.0  ;;  %v219_v8 = vmax.f32 %v183_v52, 0.0  ;;  %v2589_v40 = vld [vmem:[%s3484_s4 + $0x208] sm:$0xff] }
  0xee   : > { %2714 = vmatprep.mubr.msk.f32.mxu0 %vm301_vm0, %v3977_v26  ;;  %2911 = vmatpush1.bf16.msra.mxu1 %v2910_v39  ;;  %v4015_v39 = vmax.f32 %v2692_v53, 0.0  ;;  %v912_v3 = vmax.f32 %v2589_v40, 0.0  ;;  %v2222_v53 = vld [vmem:[#allocation2 + $0xa38] sm:$0xff] }
  0xef   : > { %3071 = vmatpush1.bf16.msra.mxu0 %v3070_v35  ;;  %3112 = vmatprep.subr.bf16.mxu1 %v3072_v41  ;;  %v182_v35 = vld [vmem:[%s3484_s4 + $0x110] sm:$0xff]  ;;  %v2226_v40 = vld [vmem:[#allocation2 + $0xa58] sm:$0xff] }
  0xf0   : > { %820 = vmatmul.mubr.f32.gmra.mrb[20].mxu1 %v4362_v63  ;;  %3073 = vmatprep.subr.bf16.mxu0 %v3072_v41  ;;  %v4020_v41 = vmax.f32 %v2695_v5, 0.0  ;;  %v218_v48 = vmax.f32 %v182_v35, 0.0  ;;  %v2215_v63 = vld [vmem:[#allocation2 + $0xa00] sm:$0xff]  ;;  %v2590_v5 = vld [vmem:[%s3484_s4 + $0x210] sm:$0xff] }
  0xf1   : > { %1938 = vmatmul.mubr.f32.gmra.mrb[20].mxu0 %v3986_v17  ;;  %2583 = vmatprep.mubr.msk.f32.mxu1 %vm301_vm0, %v4364_v58  ;;  %v2591_v58 = vld [vmem:[%s3484_s4 + $0x218] sm:$0xff]  ;;  %v3074_v52 = vpack.c.bf16 %v2217_v44, %v2215_v63  ;;  %v913_v35 = vmax.f32 %v2590_v5, 0.0  ;;  %v2228_v63 = vld [vmem:[#allocation2 + $0xa68] sm:$0xff] }
  0xf2   : > { %2715 = vmatprep.mubr.msk.f32.mxu0 %vm301_vm0, %v3990_v30  ;;  %v914_v23 = vmax.f32 %v2591_v58, 0.0  ;;  %v2230_v44 = vld [vmem:[#allocation2 + $0xa78] sm:$0xff] }
  0xf4   : > { %826 = vmatmul.mubr.f32.gmra.mrb[22].mxu1 %v4366_v12  ;;  %v3076_v12 = vpack.c.bf16 %v2222_v53, %v2220_v49  ;;  %v2227_v49 = vld [vmem:[#allocation2 + $0xa60] sm:$0xff]  ;;  %v2229_v53 = vld [vmem:[#allocation2 + $0xa70] sm:$0xff] }
  0xf5   : > { %1944 = vmatmul.mubr.f32.gmra.mrb[22].mxu0 %v4001_v14  ;;  %2584 = vmatprep.mubr.msk.f32.mxu1 %vm301_vm0, %v217_v10  ;;  %v911_v10 = vmax.f32 %v2588_v32, 0.0  ;;  %v2225_v32 = vld [vmem:[#allocation2 + $0xa50] sm:$0xff] }
  0xf6   : > { %2716 = vmatprep.mubr.msk.f32.mxu0 %vm301_vm0, %v4006_v1 }
  0xf8   : > { %832 = vmatmul.mubr.f32.gmra.mrb[24].mxu1 %v216_v24  ;;  %v2219_v24 = vld [vmem:[#allocation2 + $0xa20] sm:$0xff] }
  0xf9   : > { %1950 = vmatmul.mubr.f32.gmra.mrb[24].mxu0 %v4015_v39  ;;  %2585 = vmatprep.mubr.msk.f32.mxu1 %vm301_vm0, %v219_v8  ;;  %v2221_v8 = vld [vmem:[#allocation2 + $0xa30] sm:$0xff] }
  0xfa   : > { %2717 = vmatprep.mubr.msk.f32.mxu0 %vm301_vm0, %v4020_v41 }
  0xfc   : > { %838 = vmatmul.mubr.f32.gmra.mrb[26].mxu1 %v218_v48  ;;  %v3078_v48 = vpack.c.bf16 %v2221_v8, %v2219_v24  ;;  %v3086_v8 = vpack.c.bf16 %v2229_v53, %v2227_v49  ;;  %v2241_v49 = vld [vmem:[#allocation2 + $0xad0] sm:$0xff]  ;;  %v2246_v53 = vld [vmem:[#allocation2 + $0xaf8] sm:$0xff] }
  0xfd   : > { %1956 = vmatmul.mubr.f32.gmra.mrb[26].mxu0 %v4026_v20  ;;  %2624 = vmatprep.mubr.msk.f32.mxu1 %vm301_vm0, %v912_v3  ;;  %v2223_v3 = vld [vmem:[#allocation2 + $0xa40] sm:$0xff] }
  0xfe   : > { %2718 = vmatprep.mubr.msk.f32.mxu0 %vm301_vm0, %v1699_v19  ;;  %v3080_v19 = vpack.c.bf16 %v2226_v40, %v2224_v28  ;;  %v3082_v18 = vpack.c.bf16 %v2225_v32, %v2223_v3  ;;  %v2231_v28 = vld [vmem:[#allocation2 + $0xa80] sm:$0xff]  ;;  %v2233_v40 = vld [vmem:[#allocation2 + $0xa90] sm:$0xff]  ;;  %v2238_v3 = vld [vmem:[#allocation2 + $0xab8] sm:$0xff] }
  0xff   : > { %v3090_v32 = vpack.c.bf16 %v2233_v40, %v2231_v28  ;;  %v2251_v40 = vld [vmem:[#allocation2 + $0xb20] sm:$0xff] }
 0x100   : > { %1095 = vmatmul.mubr.f32.vlgmr.msra.gmra.mrb[0].mxu1 %v911_v10  ;;  %v3084_v10 = vpack.c.bf16 %v2230_v44, %v2228_v63  ;;  %v2235_v44 = vld [vmem:[#allocation2 + $0xaa0] sm:$0xff] }
 0x101   : > { %2102 = vmatmul.mubr.f32.vlgmr.msra.gmra.mrb[0].mxu0 %v1698_v55  ;;  %3122 = vmatpush1.bf16.msra.mxu1 %v3074_v52  ;;  %v4369_v55 = vld [vmem:[#allocation5_spill] sm:$0xff] }
 0x102   : > { %3075 = vmatpush1.bf16.msra.mxu0 %v3074_v52  ;;  %2625 = vmatprep.mubr.msk.f32.mxu1 %vm301_vm0, %v914_v23  ;;  %v4370_v58 = vmax.f32 %v4369_v55, 0.0  ;;  %v4371_v52 = vld [vmem:[#allocation6_spill] sm:$0xff]  ;;  %v2234_v23 = vld [vmem:[#allocation2 + $0xa98] sm:$0xff] }
 0x103   : > { %2719 = vmatprep.mubr.msk.f32.mxu0 %vm301_vm0, %v4367_v6  ;;  %3077 = vmatprep.subr.bf16.mxu0 %v3076_v12  ;;  %v4372_v5 = vmax.f32 %v4371_v52, 0.0  ;;  %v2240_v55 = vld [vmem:[#allocation2 + $0xac8] sm:$0xff] }
 0x104   : > { %1101 = vmatmul.mubr.f32.gmra.mrb[2].mxu1 %v913_v35  ;;  %3113 = vmatprep.subr.bf16.mxu1 %v3076_v12  ;;  %v4373_v12 = vld [vmem:[#allocation7_spill] sm:$0xff]  ;;  %v3088_v35 = vpack.c.bf16 %v2234_v23, %v2232_v54  ;;  %v2250_v23 = vld [vmem:[#allocation2 + $0xb18] sm:$0xff] }
 0x105   : > { %2108 = vmatmul.mubr.f32.gmra.mrb[2].mxu0 %v4368_v34  ;;  %2626 = vmatprep.mubr.msk.f32.mxu1 %vm301_vm0, %v4370_v58  ;;  %v4374_v24 = vmax.f32 %v4373_v12, 0.0  ;;  %v2237_v34 = vld [vmem:[#allocation2 + $0xab0] sm:$0xff]  ;;  %v2242_v58 = vld [vmem:[#allocation2 + $0xad8] sm:$0xff] }
 0x106   : > { %2720 = vmatprep.mubr.msk.f32.mxu0 %vm301_vm0, %v3904_v46  ;;  %3079 = vmatpush1.bf16.msra.mxu0 %v3078_v48  ;;  %v2245_v54 = vld [vmem:[#allocation2 + $0xaf0] sm:$0xff] }
 0x107   : > { %3123 = vmatpush1.bf16.msra.mxu1 %v3078_v48  ;;  %3081 = vmatprep.subr.bf16.mxu0 %v3080_v19  ;;  %v4375_v48 = vld [vmem:[#allocation8_spill] sm:$0xff] }
 0x108   : > { %1107 = vmatmul.mubr.f32.gmra.mrb[4].mxu1 %v4372_v5  ;;  %3114 = vmatprep.subr.bf16.mxu1 %v3080_v19  ;;  %v4376_v6 = vmax.f32 %v4375_v48, 0.0  ;;  %v2236_v19 = vld [vmem:[#allocation2 + $0xaa8] sm:$0xff]  ;;  %v2243_v5 = vld [vmem:[#allocation2 + $0xae0] sm:$0xff]  ;;  %v2253_v48 = vld [vmem:[#allocation2 + $0xb30] sm:$0xff] }
 0x109   : > { %2114 = vmatmul.mubr.f32.gmra.mrb[4].mxu0 %v3913_v37  ;;  %2627 = vmatprep.mubr.msk.f32.mxu1 %vm301_vm0, %v4374_v24  ;;  %v3092_v63 = vpack.c.bf16 %v2238_v3, %v2236_v19  ;;  %v2247_v24 = vld [vmem:[#allocation2 + $0xb00] sm:$0xff] }
 0x10a   : > { %2721 = vmatprep.mubr.msk.f32.mxu0 %vm301_vm0, %v3917_v11  ;;  %3083 = vmatpush1.bf16.msra.mxu0 %v3082_v18 }
 0x10b   : > { %3124 = vmatpush1.bf16.msra.mxu1 %v3082_v18  ;;  %3085 = vmatprep.subr.bf16.mxu0 %v3084_v10  ;;  %v3096_v18 = vpack.c.bf16 %v2242_v58, %v2240_v55 }
 0x10c   : > { %1113 = vmatmul.mubr.f32.gmra.mrb[6].mxu1 %v4376_v6  ;;  %3115 = vmatprep.subr.bf16.mxu1 %v3084_v10  ;;  %v2239_v10 = vld [vmem:[#allocation2 + $0xac0] sm:$0xff]  ;;  %v2698_v6 = vld [vmem:[%s3484_s4 + $0x4f0] sm:$0xff] }
 0x10d   : > { %2120 = vmatmul.mubr.f32.gmra.mrb[6].mxu0 %v3925_v45  ;;  %2628 = vmatprep.mubr.msk.f32.mxu1 %vm301_vm0, %v3536_v43  ;;  %v3094_v43 = vpack.c.bf16 %v2237_v34, %v2235_v44 }
 0x10e   : > { %2722 = vmatprep.mubr.msk.f32.mxu0 %vm301_vm0, %v3929_v2  ;;  %3087 = vmatpush1.bf16.msra.mxu0 %v3086_v8 }
 0x10f   : > { %3125 = vmatpush1.bf16.msra.mxu1 %v3086_v8  ;;  %3089 = vmatprep.subr.bf16.mxu0 %v3088_v35  ;;  %v2249_v8 = vld [vmem:[#allocation2 + $0xb10] sm:$0xff] }
 0x110   : > { %1119 = vmatmul.mubr.f32.gmra.mrb[8].mxu1 %v3552_v57  ;;  %3116 = vmatprep.subr.bf16.mxu1 %v3088_v35  ;;  %v2244_v57 = vld [vmem:[#allocation2 + $0xae8] sm:$0xff]  ;;  %v2254_v35 = vld [vmem:[#allocation2 + $0xb38] sm:$0xff] }
 0x111   : > { %2126 = vmatmul.mubr.f32.gmra.mrb[8].mxu0 %v3937_v47  ;;  %2629 = vmatprep.mubr.msk.f32.mxu1 %vm301_vm0, %v3559_v62  ;;  %v3098_v62 = vpack.c.bf16 %v2241_v49, %v2239_v10  ;;  %v3100_v52 = vpack.c.bf16 %v2246_v53, %v2244_v57 }
 0x112   : > { %2723 = vmatprep.mubr.msk.f32.mxu0 %vm301_vm0, %v3941_v15  ;;  %3091 = vmatpush1.bf16.msra.mxu0 %v3090_v32 }
 0x113   : > { %3126 = vmatpush1.bf16.msra.mxu1 %v3090_v32  ;;  %3093 = vmatprep.subr.bf16.mxu0 %v3092_v63 }
 0x114   : > { %1125 = vmatmul.mubr.f32.gmra.mrb[10].mxu1 %v3570_v22  ;;  %3117 = vmatprep.subr.bf16.mxu1 %v3092_v63  ;;  %v2248_v22 = vld [vmem:[#allocation2 + $0xb08] sm:$0xff] }
 0x115   : > { %2132 = vmatmul.mubr.f32.gmra.mrb[10].mxu0 %v3949_v36  ;;  %2630 = vmatprep.mubr.msk.f32.mxu1 %vm301_vm0, %v3577_v29  ;;  %v3102_v29 = vpack.c.bf16 %v2245_v54, %v2243_v5  ;;  %v3104_v12 = vpack.c.bf16 %v2250_v23, %v2248_v22 }
 0x116   : > { %2724 = vmatprep.mubr.msk.f32.mxu0 %vm301_vm0, %v3953_v56  ;;  %3095 = vmatpush1.bf16.msra.mxu0 %v3094_v43 }
 0x117   : > { %3127 = vmatpush1.bf16.msra.mxu1 %v3094_v43  ;;  %3097 = vmatprep.subr.bf16.mxu0 %v3096_v18 }
 0x118   : > { %1131 = vmatmul.mubr.f32.gmra.mrb[12].mxu1 %v3588_v51  ;;  %3118 = vmatprep.subr.bf16.mxu1 %v3096_v18  ;;  %v2252_v51 = vld [vmem:[#allocation2 + $0xb28] sm:$0xff] }
 0x119   : > { %2138 = vmatmul.mubr.f32.gmra.mrb[12].mxu0 %v3961_v25  ;;  %2631 = vmatprep.mubr.msk.f32.mxu1 %vm301_vm0, %v3595_v59  ;;  %v3106_v59 = vpack.c.bf16 %v2249_v8, %v2247_v24  ;;  %v3108_v28 = vpack.c.bf16 %v2254_v35, %v2252_v51 }
 0x11a   : > { %2725 = vmatprep.mubr.msk.f32.mxu0 %vm301_vm0, %v3965_v27  ;;  %3099 = vmatpush1.bf16.msra.mxu0 %v3098_v62 }
 0x11b   : > { %3128 = vmatpush1.bf16.msra.mxu1 %v3098_v62  ;;  %3101 = vmatprep.subr.bf16.mxu0 %v3100_v52 }
 0x11c   : > { %1137 = vmatmul.mubr.f32.gmra.mrb[14].mxu1 %v3606_v21  ;;  %3119 = vmatprep.subr.bf16.mxu1 %v3100_v52  ;;  %v3110_v21 = vpack.c.bf16 %v2253_v48, %v2251_v40 }
 0x11d   : > { %2144 = vmatmul.mubr.f32.gmra.mrb[14].mxu0 %v3973_v61  ;;  %2632 = vmatprep.mubr.msk.f32.mxu1 %vm301_vm0, %v3613_v31  ;;  %v2697_v31 = vld [vmem:[%s3484_s4 + $0x4e8] sm:$0xff] }
 0x11e   : > { %2726 = vmatprep.mubr.msk.f32.mxu0 %vm301_vm0, %v3977_v26  ;;  %3103 = vmatpush1.bf16.msra.mxu0 %v3102_v29 }
 0x11f   : > { %3129 = vmatpush1.bf16.msra.mxu1 %v3102_v29  ;;  %3105 = vmatprep.subr.bf16.mxu0 %v3104_v12 }
 0x120   : > { %1143 = vmatmul.mubr.f32.gmra.mrb[16].mxu1 %v3624_v60  ;;  %3120 = vmatprep.subr.bf16.mxu1 %v3104_v12  ;;  %v1723_v60 = vmax.f32 %v2697_v31, 0.0 }
 0x121   : > { %2150 = vmatmul.mubr.f32.gmra.mrb[16].mxu0 %v3986_v17  ;;  %2633 = vmatprep.mubr.msk.f32.mxu1 %vm301_vm0, %v3631_v4  ;;  %v2696_v4 = vld [vmem:[%s3484_s4 + $0x4e0] sm:$0xff] }
 0x122   : > { %2727 = vmatprep.mubr.msk.f32.mxu0 %vm301_vm0, %v3990_v30  ;;  %3107 = vmatpush1.bf16.msra.mxu0 %v3106_v59 }
 0x123   : > { %3130 = vmatpush1.bf16.msra.mxu1 %v3106_v59  ;;  %3109 = vmatprep.subr.bf16.mxu0 %v3108_v28 }
 0x124   : > { %1149 = vmatmul.mubr.f32.gmra.mrb[18].mxu1 %v3642_v42  ;;  %3121 = vmatprep.subr.bf16.mxu1 %v3108_v28  ;;  %v2699_v42 = vld [vmem:[%s3484_s4 + $0x4f8] sm:$0xff] }
 0x125   : > { %2156 = vmatmul.mubr.f32.gmra.mrb[18].mxu0 %v4001_v14  ;;  %2634 = vmatprep.mubr.msk.f32.mxu1 %vm301_vm0, %v3649_v50  ;;  %v1722_v50 = vmax.f32 %v2696_v4, 0.0 }
 0x126   : > { %2728 = vmatprep.mubr.msk.f32.mxu0 %vm301_vm0, %v4006_v1  ;;  %3111 = vmatpush1.bf16.msra.mxu0 %v3110_v21 }
 0x127   : > { %3131 = vmatpush1.bf16.msra.mxu1 %v3110_v21 }
 0x128   : > { %1155 = vmatmul.mubr.f32.gmra.mrb[20].mxu1 %v3660_v16  ;;  %v1725_v16 = vmax.f32 %v2699_v42, 0.0 }
 0x129   : > { %2162 = vmatmul.mubr.f32.gmra.mrb[20].mxu0 %v4015_v39  ;;  %2635 = vmatprep.mubr.msk.f32.mxu1 %vm301_vm0, %v3667_v33  ;;  %v1724_v33 = vmax.f32 %v2698_v6, 0.0 }
 0x12a   : > { %2729 = vmatprep.mubr.msk.f32.mxu0 %vm301_vm0, %v4020_v41 }
 0x12c   : > { %1161 = vmatmul.mubr.f32.gmra.mrb[22].mxu1 %v3678_v13  ;;  %v2701_v13 = vld [vmem:[%s3484_s4 + $0x508] sm:$0xff] }
 0x12d   : > { %2168 = vmatmul.mubr.f32.gmra.mrb[22].mxu0 %v4026_v20  ;;  %2636 = vmatprep.mubr.msk.f32.mxu1 %vm301_vm0, %v3685_v7  ;;  %v1727_v7 = vmax.f32 %v2701_v13, 0.0 }
 0x12e   : > { %2730 = vmatprep.mubr.msk.f32.mxu0 %vm301_vm0, %v1723_v60 }
 0x130   : > { %1167 = vmatmul.mubr.f32.gmra.mrb[24].mxu1 %v3696_v38  ;;  %v2700_v38 = vld [vmem:[%s3484_s4 + $0x500] sm:$0xff] }
 0x131   : > { %2174 = vmatmul.mubr.f32.gmra.mrb[24].mxu0 %v1722_v50  ;;  %2637 = vmatprep.mubr.msk.f32.mxu1 %vm301_vm0, %v3703_v9  ;;  %v2703_v9 = vld [vmem:[%s3484_s4 + $0x518] sm:$0xff] }
 0x132   : > { %2731 = vmatprep.mubr.msk.f32.mxu0 %vm301_vm0, %v1725_v16 }
 0x134   : > { %1173 = vmatmul.mubr.f32.gmra.mrb[26].mxu1 %v3718_v0  ;;  %v1726_v0 = vmax.f32 %v2700_v38, 0.0 }
 0x135   : > { %2180 = vmatmul.mubr.f32.gmra.mrb[26].mxu0 %v1724_v33  ;;  %2739 = vmatprep.mubr.msk.f32.mxu1 %vm301_vm0, %v3990_v30 }
 0x136   : > { %2732 = vmatprep.mubr.msk.f32.mxu0 %vm301_vm0, %v3904_v46  ;;  %v1729_v46 = vmax.f32 %v2703_v9, 0.0 }
 0x138   : > { %2368 = vmatmul.mubr.f32.vlgmr.msra.gmra.mrb[28].mxu1 %v4001_v14 }
 0x139   : > { %2326 = vmatmul.mubr.f32.vlgmr.msra.gmra.mrb[0].mxu0 %v3913_v37  ;;  %2740 = vmatprep.mubr.msk.f32.mxu1 %vm301_vm0, %v4006_v1  ;;  %v2702_v37 = vld [vmem:[%s3484_s4 + $0x510] sm:$0xff] }
 0x13a   : > { %2733 = vmatprep.mubr.msk.f32.mxu0 %vm301_vm0, %v3917_v11  ;;  %v1728_v11 = vmax.f32 %v2702_v37, 0.0 }
 0x13c   : > { %2374 = vmatmul.mubr.f32.gmra.mrb[30].mxu1 %v4015_v39 }
 0x13d   : > { %2332 = vmatmul.mubr.f32.gmra.mrb[2].mxu0 %v3925_v45  ;;  %2741 = vmatprep.mubr.msk.f32.mxu1 %vm301_vm0, %v4020_v41 }
 0x13e   : > { %2734 = vmatprep.mubr.msk.f32.mxu0 %vm301_vm0, %v3929_v2 }
 0x140   : > { %2380 = vmatmul.mubr.f32.gmra.mrb[32].mxu1 %v4026_v20 }
 0x141   : > { %2338 = vmatmul.mubr.f32.gmra.mrb[4].mxu0 %v3937_v47  ;;  %2742 = vmatprep.mubr.msk.f32.mxu1 %vm301_vm0, %v1723_v60 }
 0x142   : > { %2735 = vmatprep.mubr.msk.f32.mxu0 %vm301_vm0, %v3941_v15 }
 0x144   : > { %2386 = vmatmul.mubr.f32.gmra.mrb[34].mxu1 %v1722_v50 }
 0x145   : > { %2344 = vmatmul.mubr.f32.gmra.mrb[6].mxu0 %v3949_v36  ;;  %2743 = vmatprep.mubr.msk.f32.mxu1 %vm301_vm0, %v1725_v16 }
 0x146   : > { %2736 = vmatprep.mubr.msk.f32.mxu0 %vm301_vm0, %v3953_v56 }
 0x148   : > { %2392 = vmatmul.mubr.f32.gmra.mrb[36].mxu1 %v1724_v33 }
 0x149   : > { %2350 = vmatmul.mubr.f32.gmra.mrb[8].mxu0 %v3961_v25  ;;  %2744 = vmatprep.mubr.msk.f32.mxu1 %vm301_vm0, %v1727_v7 }
 0x14a   : > { %2737 = vmatprep.mubr.msk.f32.mxu0 %vm301_vm0, %v3965_v27 }
 0x14c   : > { %2398 = vmatmul.mubr.f32.gmra.mrb[38].mxu1 %v1726_v0 }
 0x14d   : > { %2356 = vmatmul.mubr.f32.gmra.mrb[10].mxu0 %v3973_v61  ;;  %2745 = vmatprep.mubr.msk.f32.mxu1 %vm301_vm0, %v1729_v46 }
 0x14e   : > { %2738 = vmatprep.mubr.msk.f32.mxu0 %vm301_vm0, %v3977_v26 }
 0x150   : > { %2404 = vmatmul.mubr.f32.gmra.mrb[40].mxu1 %v1728_v11 }
 0x151   : > { %2362 = vmatmul.mubr.f32.gmra.mrb[12].mxu0 %v3986_v17 }
 0x1d3   : > { %v4160_v45 = vpop.f32.mrb[0].mxu1 }
 0x1d4   : > { %v4162_v2 = vpop.f32.mrb[1].mxu1 }
 0x1d7   : > { %v4164_v47 = vpop.f32.mrb[2].mxu1 }
 0x1d8   : > { %v4166_v15 = vpop.f32.mrb[3].mxu1 }
 0x1db   : > { %v4168_v36 = vpop.f32.mrb[4].mxu1 }
 0x1dc   : > { %v4170_v56 = vpop.f32.mrb[5].mxu1 }
 0x1df   : > { %v4172_v25 = vpop.f32.mrb[6].mxu1 }
 0x1e0   : > { %v4174_v27 = vpop.f32.mrb[7].mxu1 }
 0x1e3   : > { %v4176_v61 = vpop.f32.mrb[8].mxu1 }
 0x1e4   : > { %v4178_v26 = vpop.f32.mrb[9].mxu1 }
 0x1e7   : > { %v4180_v17 = vpop.f32.mrb[10].mxu1 }
 0x1e8   : > { %v4182_v30 = vpop.f32.mrb[11].mxu1 }
 0x1eb   : > { %v4184_v14 = vpop.f32.mrb[12].mxu1 }
 0x1ec   : > { %v4186_v1 = vpop.f32.mrb[13].mxu1 }
 0x1ef   : > { %v1138_v39 = vpop.f32.mrb[14].mxu1 }
 0x1f0   : > { %v2145_v41 = vpop.f32.mrb[14].mxu0  ;;  %v1140_v20 = vpop.f32.mrb[15].mxu1 }
 0x1f1   : > { %v3146_v19 = vadd.f32 %v2145_v41, %v1138_v39  ;;  %v2147_v3 = vpop.f32.mrb[15].mxu0 }
 0x1f2   : > { %v3148_v32 = vadd.f32 %v2147_v3, %v1140_v20 }
 0x1f3   : > { %v1144_v63 = vpop.f32.mrb[16].mxu1 }
 0x1f4   : > { %v2151_v44 = vpop.f32.mrb[16].mxu0  ;;  %v1146_v34 = vpop.f32.mrb[17].mxu1 }
 0x1f5   : > { %v3150_v55 = vadd.f32 %v2151_v44, %v1144_v63  ;;  %v2153_v58 = vpop.f32.mrb[17].mxu0 }
 0x1f6   : > { %v3152_v43 = vadd.f32 %v2153_v58, %v1146_v34 }
 0x1f7   : > { %v1150_v18 = vpop.f32.mrb[18].mxu1 }
 0x1f8   : > { %v2157_v10 = vpop.f32.mrb[18].mxu0  ;;  %v1152_v49 = vpop.f32.mrb[19].mxu1 }
 0x1f9   : > { %v3154_v57 = vadd.f32 %v2157_v10, %v1150_v18  ;;  %v2159_v53 = vpop.f32.mrb[19].mxu0 }
 0x1fa   : > { %v3156_v62 = vadd.f32 %v2159_v53, %v1152_v49 }
 0x1fb   : > { %v1156_v52 = vpop.f32.mrb[20].mxu1 }
 0x1fc   : > { %v2163_v5 = vpop.f32.mrb[20].mxu0  ;;  %v1158_v54 = vpop.f32.mrb[21].mxu1 }
 0x1fd   : > { %v4189_v22 = vadd.f32 %v2163_v5, %v1156_v52  ;;  %v2165_v23 = vpop.f32.mrb[21].mxu0 }
 0x1fe   : > { %v4191_v29 = vadd.f32 %v2165_v23, %v1158_v54 }
 0x1ff   : > { %v1162_v12 = vpop.f32.mrb[22].mxu1 }
 0x200   : > { %v2169_v24 = vpop.f32.mrb[22].mxu0  ;;  %v1164_v8 = vpop.f32.mrb[23].mxu1 }
 0x201   : > { %v4193_v51 = vadd.f32 %v2169_v24, %v1162_v12  ;;  %v2171_v35 = vpop.f32.mrb[23].mxu0 }
 0x202   : > { %v4195_v59 = vadd.f32 %v2171_v35, %v1164_v8 }
 0x203   : > { %v1168_v28 = vpop.f32.mrb[24].mxu1 }
 0x204   : > { %v2175_v40 = vpop.f32.mrb[24].mxu0  ;;  %v1170_v48 = vpop.f32.mrb[25].mxu1 }
 0x205   : > { %v4197_v21 = vadd.f32 %v2175_v40, %v1168_v28  ;;  %v2177_v31 = vpop.f32.mrb[25].mxu0 }
 0x206   : > { %v4199_v60 = vadd.f32 %v2177_v31, %v1170_v48 }
 0x207   : > { %v1174_v4 = vpop.f32.mrb[26].mxu1 }
 0x208   : > { %v2181_v42 = vpop.f32.mrb[26].mxu0  ;;  %v1176_v50 = vpop.f32.mrb[27].mxu1 }
 0x209   : > { %v4201_v16 = vadd.f32 %v2181_v42, %v1174_v4  ;;  %v2183_v6 = vpop.f32.mrb[27].mxu0 }
 0x20a   : > { %v4203_v33 = vadd.f32 %v2183_v6, %v1176_v50 }
 0x20b   : > { %v2369_v13 = vpop.f32.mrb[28].mxu1 }
 0x20c   : > { %v2327_v7 = vpop.f32.mrb[0].mxu0  ;;  %v3147_v38 = vadd.f32 %v3146_v19, %v2369_v13  ;;  %v2371_v9 = vpop.f32.mrb[29].mxu1 }
 0x20d   : > { %v3132_v0 = vadd.f32 %v2327_v7, %v4160_v45  ;;  %v2329_v46 = vpop.f32.mrb[1].mxu0  ;;  %v3149_v37 = vadd.f32 %v3148_v32, %v2371_v9 }
 0x20e   : > { %2452 = vst [vmem:[%s4208_s10 + $0x70] sm:$0xff] %v3147_v38  ;;  %v3133_v11 = vadd.f32 %v2329_v46, %v4162_v2 }
 0x20f   : > { %2438 = vst [vmem:[%s4208_s10] sm:$0xff] %v3132_v0  ;;  %2453 = vst.msk [vmem:[%s4208_s10 + $0x78] sm:$0xff] %vm301_vm0, %v3149_v37  ;;  %v2375_v39 = vpop.f32.mrb[30].mxu1 }
 0x210   : > { %2439 = vst.msk [vmem:[%s4208_s10 + $0x8] sm:$0xff] %vm301_vm0, %v3133_v11  ;;  %v2333_v41 = vpop.f32.mrb[2].mxu0  ;;  %v3151_v20 = vadd.f32 %v3150_v55, %v2375_v39  ;;  %v2377_v19 = vpop.f32.mrb[31].mxu1 }
 0x211   : > { %v3134_v45 = vadd.f32 %v2333_v41, %v4164_v47  ;;  %v2335_v3 = vpop.f32.mrb[3].mxu0  ;;  %v3153_v32 = vadd.f32 %v3152_v43, %v2377_v19 }
 0x212   : > { %2454 = vst [vmem:[%s4208_s10 + $0x80] sm:$0xff] %v3151_v20  ;;  %v3135_v2 = vadd.f32 %v2335_v3, %v4166_v15 }
 0x213   : > { %2440 = vst [vmem:[%s4208_s10 + $0x10] sm:$0xff] %v3134_v45  ;;  %2455 = vst.msk [vmem:[%s4208_s10 + $0x88] sm:$0xff] %vm301_vm0, %v3153_v32  ;;  %v2381_v63 = vpop.f32.mrb[32].mxu1 }
 0x214   : > { %2441 = vst.msk [vmem:[%s4208_s10 + $0x18] sm:$0xff] %vm301_vm0, %v3135_v2  ;;  %v2339_v44 = vpop.f32.mrb[4].mxu0  ;;  %v3155_v34 = vadd.f32 %v3154_v57, %v2381_v63  ;;  %v2383_v55 = vpop.f32.mrb[33].mxu1 }
 0x215   : > { %v3136_v47 = vadd.f32 %v2339_v44, %v4168_v36  ;;  %v2341_v58 = vpop.f32.mrb[5].mxu0  ;;  %v3157_v43 = vadd.f32 %v3156_v62, %v2383_v55 }
 0x216   : > { %2456 = vst [vmem:[%s4208_s10 + $0x90] sm:$0xff] %v3155_v34  ;;  %v3137_v15 = vadd.f32 %v2341_v58, %v4170_v56 }
 0x217   : > { %2442 = vst [vmem:[%s4208_s10 + $0x20] sm:$0xff] %v3136_v47  ;;  %2457 = vst.msk [vmem:[%s4208_s10 + $0x98] sm:$0xff] %vm301_vm0, %v3157_v43  ;;  %v2387_v18 = vpop.f32.mrb[34].mxu1 }
 0x218   : > { %2443 = vst.msk [vmem:[%s4208_s10 + $0x28] sm:$0xff] %vm301_vm0, %v3137_v15  ;;  %v2345_v10 = vpop.f32.mrb[6].mxu0  ;;  %v3159_v49 = vadd.f32 %v4189_v22, %v2387_v18  ;;  %v2389_v57 = vpop.f32.mrb[35].mxu1 }
 0x219   : > { %v3138_v36 = vadd.f32 %v2345_v10, %v4172_v25  ;;  %v2347_v53 = vpop.f32.mrb[7].mxu0  ;;  %v3161_v62 = vadd.f32 %v4191_v29, %v2389_v57 }
 0x21a   : > { %2458 = vst [vmem:[%s4208_s10 + $0xa0] sm:$0xff] %v3159_v49  ;;  %v3139_v56 = vadd.f32 %v2347_v53, %v4174_v27 }
 0x21b   : > { %2444 = vst [vmem:[%s4208_s10 + $0x30] sm:$0xff] %v3138_v36  ;;  %2459 = vst.msk [vmem:[%s4208_s10 + $0xa8] sm:$0xff] %vm301_vm0, %v3161_v62  ;;  %v2393_v52 = vpop.f32.mrb[36].mxu1 }
 0x21c   : > { %2445 = vst.msk [vmem:[%s4208_s10 + $0x38] sm:$0xff] %vm301_vm0, %v3139_v56  ;;  %v2351_v5 = vpop.f32.mrb[8].mxu0  ;;  %v3163_v54 = vadd.f32 %v4193_v51, %v2393_v52  ;;  %v2395_v22 = vpop.f32.mrb[37].mxu1 }
 0x21d   : > { %v3140_v25 = vadd.f32 %v2351_v5, %v4176_v61  ;;  %v2353_v23 = vpop.f32.mrb[9].mxu0  ;;  %v3165_v29 = vadd.f32 %v4195_v59, %v2395_v22 }
 0x21e   : > { %2460 = vst [vmem:[%s4208_s10 + $0xb0] sm:$0xff] %v3163_v54  ;;  %v3141_v27 = vadd.f32 %v2353_v23, %v4178_v26 }
 0x21f   : > { %2446 = vst [vmem:[%s4208_s10 + $0x40] sm:$0xff] %v3140_v25  ;;  %2461 = vst.msk [vmem:[%s4208_s10 + $0xb8] sm:$0xff] %vm301_vm0, %v3165_v29  ;;  %v2399_v12 = vpop.f32.mrb[38].mxu1 }
 0x220   : > { %2447 = vst.msk [vmem:[%s4208_s10 + $0x48] sm:$0xff] %vm301_vm0, %v3141_v27  ;;  %v2357_v24 = vpop.f32.mrb[10].mxu0  ;;  %v3167_v8 = vadd.f32 %v4197_v21, %v2399_v12  ;;  %v2401_v51 = vpop.f32.mrb[39].mxu1 }
 0x221   : > { %v3142_v61 = vadd.f32 %v2357_v24, %v4180_v17  ;;  %v2359_v35 = vpop.f32.mrb[11].mxu0  ;;  %v3169_v59 = vadd.f32 %v4199_v60, %v2401_v51 }
 0x222   : > { %2462 = vst [vmem:[%s4208_s10 + $0xc0] sm:$0xff] %v3167_v8  ;;  %v3143_v26 = vadd.f32 %v2359_v35, %v4182_v30 }
 0x223   : > { %2448 = vst [vmem:[%s4208_s10 + $0x50] sm:$0xff] %v3142_v61  ;;  %2463 = vst.msk [vmem:[%s4208_s10 + $0xc8] sm:$0xff] %vm301_vm0, %v3169_v59  ;;  %v2405_v28 = vpop.f32.mrb[40].mxu1 }
 0x224   : > { %2449 = vst.msk [vmem:[%s4208_s10 + $0x58] sm:$0xff] %vm301_vm0, %v3143_v26  ;;  %v2363_v40 = vpop.f32.mrb[12].mxu0  ;;  %v3171_v48 = vadd.f32 %v4201_v16, %v2405_v28  ;;  %v2407_v21 = vpop.f32.mrb[41].mxu1 }
 0x225   : > { %v3144_v17 = vadd.f32 %v2363_v40, %v4184_v14  ;;  %v2365_v31 = vpop.f32.mrb[13].mxu0  ;;  %v3173_v60 = vadd.f32 %v4203_v33, %v2407_v21 }
 0x226   : > { %2464 = vst [vmem:[%s4208_s10 + $0xd0] sm:$0xff] %v3171_v48  ;;  %v3145_v4 = vadd.f32 %v2365_v31, %v4186_v1 }
 0x227   : > { %2450 = vst [vmem:[%s4208_s10 + $0x60] sm:$0xff] %v3144_v17  ;;  %2465 = vst.msk [vmem:[%s4208_s10 + $0xd8] sm:$0xff] %vm301_vm0, %v3173_v60 }
 0x228   : > { %2451 = vst.msk [vmem:[%s4208_s10 + $0x68] sm:$0xff] %vm301_vm0, %v3145_v4 }
 0x229 PF: > { %s13_s9 = sadd.s32 1, %s3415_s9  }
 0x22a   : > { %p10_p3 = scmp.ge.s32.totalorder %s13_s9, 4  }
 0x22c   :  { %12 = sbr.rel (!%p10_p3) target bundleno = 1 (0x1), region = 71 }
 0x233   :  { %2490 = vsyncpa [#allocation3], 1 }
 0x234   :  { %2492 = vsyncpa [#allocation3 + $0x1], 1 }

</bundles_post_ra>
